<compile_context>
chip_gen: v7x
topology: tpu7x:2x2x1
jax: 0.10.0
libtpu: 0.0.40
codegen_flags: <defaults>
</compile_context>

<pallas_src>
import functools
import math

import jax
import jax.numpy as jnp
from jax import lax
from jax.experimental import pallas as pl
from jax.experimental.pallas import tpu as pltpu


# ---------------------------------------------------------------------------
# Pallas kernel: full forward pass for Nb batch samples per grid step.
# ---------------------------------------------------------------------------
def mhta_kernel(x_ref, pe_ref, wqkv_ref, bqkv_ref, wf_ref, bf_ref,
                bns_ref, bnb_ref, o_ref, *, H, Nb, T, DV, icV):
    M = Nb * T
    B = Nb * H

    # x += pos_embedding, then flatten tokens: (Nb, T, DV) -> (Nb*T, DV)
    xp = (x_ref[...] + pe_ref[...][None]).reshape(M, DV)
    xp_bf = xp.astype(jnp.bfloat16)
    # TODO(synk): at realistic M (>=256) stash xp in a small VMEM scratch (or
    # recompute x+pe at the tail) instead of keeping xp and xp_bf live.

    # Fused Q/K/V projection for all heads in one MXU push:
    #   (M, DV) @bf16 (DV, 3*DV) -> (M, 3*DV) f32, columns [Q | K | V]
    # (head-major within each third).  1/sqrt(d_k) is pre-folded into the Q
    # columns and the first (eval-mode) BatchNorm scale into the V columns.
    qkv = jnp.dot(xp_bf, wqkv_ref[...],
                  preferred_element_type=jnp.float32) + bqkv_ref[...]

    # Heads become a batch axis: one batched einsum pair instead of an
    # unrolled per-head loop.  Slices below are full-128-lane aligned since
    # they are taken at DV boundaries.
    def heads(block):                       # (M, DV) -> (Nb*H, T, icV), bf16
        b4 = block.reshape(Nb, T, H, icV)
        return jnp.transpose(b4, (0, 2, 1, 3)).reshape(B, T, icV).astype(jnp.bfloat16)

    q = heads(qkv[:, 0:DV])
    k = heads(qkv[:, DV:2 * DV])
    v = heads(qkv[:, 2 * DV:3 * DV])

    # Additive causal ("subsequent") mask, built once (no per-head vselect).
    row = lax.broadcasted_iota(jnp.int32, (T, T), 0)
    col = lax.broadcasted_iota(jnp.int32, (T, T), 1)
    neg = jnp.where(col > row, jnp.float32(-1e9), jnp.float32(0.0))   # (T, T)

    # batched over (Nb*H); k fed to the MXU untransposed
    s = jnp.einsum("btd,bsd->bts", q, k,
                   preferred_element_type=jnp.float32) + neg[None]
    m = jnp.max(s, axis=-1, keepdims=True)
    p = jnp.exp(s - m)
    inv = pl.reciprocal(jnp.sum(p, axis=-1, keepdims=True), approx=True)
    o = jnp.einsum("bts,bsd->btd", p.astype(jnp.bfloat16), v,
                   preferred_element_type=jnp.float32) * inv          # (B, T, icV)

    # Lane-concatenate heads back in registers (XLU relayout, no masked
    # sub-128-lane VMEM stores / scratch round trip) -> single full-width write.
    z = jnp.transpose(o.reshape(Nb, H, T, icV), (0, 2, 1, 3)).reshape(M, DV)

    bns = bns_ref[...]                                                # (1, DV)
    bnb = bnb_ref[...]                                                # (1, DV)

    # first BatchNorm (scale already folded into V projection) + residual
    z1 = z + bnb + xp
    # FFN (1x1 conv on the flattened feature axis) + ReLU
    f = jnp.dot(z1.astype(jnp.bfloat16), wf_ref[...],
                preferred_element_type=jnp.float32) + bf_ref[...]
    f = jnp.maximum(f, 0.0)
    # second residual + second BatchNorm:  (f + xp) * bns + bnb
    out = f * bns + (xp * bns + bnb)
    o_ref[...] = out.reshape(Nb, T, DV)


# ---------------------------------------------------------------------------
# Wrapper: pallas_call + layout glue.
# ---------------------------------------------------------------------------
def mhta_forward(x, params, *, grid_steps=None):
    """x: (N, D, T, V) float32.  Returns (z, cls_tokens=None), z: (N, D, T, V)."""
    N, D, T, V = x.shape
    H = params["H"]
    ic = D // H
    DV, icV = D * V, ic * V

    # Default: a single grid step (v5e/v6e have one TensorCore -> maximize the
    # MXU M-dim = N*T and avoid per-step overhead).  Only split (for v7x's two
    # TCs) when each half still feeds the MXU at least 256 rows.
    if grid_steps is None:
        grid_steps = 2 if (N % 2 == 0 and (N // 2) * T >= 256) else 1
    assert N % grid_steps == 0
    Nb = N // grid_steps

    # PyTorch: x.permute(0,2,1,3).reshape(N, T, D*V)
    x_flat = jnp.transpose(x, (0, 2, 1, 3)).reshape(N, T, DV)

    kernel = functools.partial(mhta_kernel, H=H, Nb=Nb, T=T, DV=DV, icV=icV)

    out_flat = pl.pallas_call(
        kernel,
        out_shape=jax.ShapeDtypeStruct((N, T, DV), jnp.float32),
        grid_spec=pltpu.PrefetchScalarGridSpec(
            num_scalar_prefetch=0,
            grid=(grid_steps,),
            in_specs=[
                pl.BlockSpec((Nb, T, DV), lambda n: (n, 0, 0)),   # x_flat
                pl.BlockSpec((T, DV), lambda n: (0, 0)),          # pos embedding
                pl.BlockSpec((DV, 3 * DV), lambda n: (0, 0)),     # fused QKV W (bf16)
                pl.BlockSpec((1, 3 * DV), lambda n: (0, 0)),      # fused QKV bias
                pl.BlockSpec((DV, DV), lambda n: (0, 0)),         # FFN W (bf16)
                pl.BlockSpec((1, DV), lambda n: (0, 0)),          # FFN bias
                pl.BlockSpec((1, DV), lambda n: (0, 0)),          # BN scale
                pl.BlockSpec((1, DV), lambda n: (0, 0)),          # BN bias
            ],
            out_specs=pl.BlockSpec((Nb, T, DV), lambda n: (n, 0, 0)),
        ),
        compiler_params=pltpu.CompilerParams(
            dimension_semantics=("parallel",),
            vmem_limit_bytes=32 * 1024 * 1024,
        ),
    )(x_flat, params["pe"], params["w_qkv"], params["b_qkv"],
      params["wf_exp"], params["bf_exp"],
      params["bn_scale_exp"], params["bn_bias_exp"])

    # back to (N, D, T, V)
    z = jnp.transpose(out_flat.reshape(N, T, D, V), (0, 2, 1, 3))
    return z, None


# ---------------------------------------------------------------------------
# Deterministic parameter construction (synthetic init; no checkpoint loading).
# ---------------------------------------------------------------------------
def init_params(key, D, H, T, V):
    ic = D // H
    DV, icV = D * V, ic * V
    ks = jax.random.split(key, 9)

    # per-head 1x1 conv weights (out=ic, in=D) and biases, as nn.Conv2d(D, ic, 1)
    wq = 0.1 * jax.random.normal(ks[0], (H, ic, D), jnp.float32)
    wk = 0.1 * jax.random.normal(ks[1], (H, ic, D), jnp.float32)
    wv = 0.1 * jax.random.normal(ks[2], (H, ic, D), jnp.float32)
    bq = 0.1 * jax.random.normal(ks[3], (H, ic), jnp.float32)
    bk = 0.1 * jax.random.normal(ks[4], (H, ic), jnp.float32)
    bv = 0.1 * jax.random.normal(ks[5], (H, ic), jnp.float32)

    # ffn 1x1 conv (D -> D)
    wf = 0.1 * jax.random.normal(ks[6], (D, D), jnp.float32)
    bf = 0.1 * jax.random.normal(ks[7], (D,), jnp.float32)

    # pos_embedding = nn.Parameter(torch.randn(1, T, D*V))
    pe = jax.random.normal(ks[8], (T, DV), jnp.float32)

    # BatchNorm2d(D) defaults (eval mode): gamma=1, beta=0, mean=0, var=1
    bn_gamma = jnp.ones((D,), jnp.float32)
    bn_beta = jnp.zeros((D,), jnp.float32)
    bn_mean = jnp.zeros((D,), jnp.float32)
    bn_var = jnp.ones((D,), jnp.float32)
    eps = 1e-5
    bn_scale = bn_gamma / jnp.sqrt(bn_var + eps)
    bn_bias = bn_beta - bn_mean * bn_scale

    bn_scale_exp = jnp.repeat(bn_scale, V)            # (DV,) feature index d*V+v
    bn_bias_exp = jnp.repeat(bn_bias, V)

    # Expand 1x1 convs to block-diagonal matmul weights over the flattened
    # (d*V + v) feature axis:  W_exp = kron(W.T, I_V)  -> (D*V, C*V).
    eyeV = jnp.eye(V, dtype=jnp.float32)
    expand_w = lambda w: jnp.kron(w.T, eyeV)

    wq_cat = jnp.concatenate([expand_w(wq[h]) for h in range(H)], axis=1)  # (DV, DV)
    wk_cat = jnp.concatenate([expand_w(wk[h]) for h in range(H)], axis=1)
    wv_cat = jnp.concatenate([expand_w(wv[h]) for h in range(H)], axis=1)
    bq_cat = jnp.repeat(bq, V, axis=-1).reshape(DV)                        # head-major
    bk_cat = jnp.repeat(bk, V, axis=-1).reshape(DV)
    bv_cat = jnp.repeat(bv, V, axis=-1).reshape(DV)

    # Free folds: 1/sqrt(d_k) into the Q projection; first (eval-mode) BN
    # scale into the V projection (exact since it is a per-column constant).
    inv_sqrt_dk = 1.0 / math.sqrt(icV)
    wq_s, bq_s = wq_cat * inv_sqrt_dk, bq_cat * inv_sqrt_dk
    wv_s, bv_s = wv_cat * bn_scale_exp[None, :], bv_cat * bn_scale_exp

    # Fused QKV weight [Q heads | K heads | V heads], bf16 for the MXU.
    w_qkv = jnp.concatenate([wq_s, wk_cat, wv_s], axis=1).astype(jnp.bfloat16)
    b_qkv = jnp.concatenate([bq_s, bk_cat, bv_s])[None, :]                 # (1, 3*DV) f32

    wf_exp = expand_w(wf).astype(jnp.bfloat16)                             # (DV, DV)
    bf_exp = jnp.repeat(bf, V)[None, :]                                    # (1, DV)

    return dict(H=H, pe=pe,
                wq=wq, wk=wk, wv=wv, bq=bq, bk=bk, bv=bv, wf=wf, bf=bf,
                bn_scale=bn_scale, bn_bias=bn_bias,
                w_qkv=w_qkv, b_qkv=b_qkv, wf_exp=wf_exp, bf_exp=bf_exp,
                bn_scale_exp=bn_scale_exp[None, :],
                bn_bias_exp=bn_bias_exp[None, :])


# ---------------------------------------------------------------------------
# Pure-JAX f32 reference mirroring the PyTorch forward (eval mode).
# ---------------------------------------------------------------------------
def reference_forward(x, p):
    N, D, T, V = x.shape
    H = p["H"]
    ic = D // H

    def bn(z_ndtv):
        return (z_ndtv * p["bn_scale"][None, :, None, None]
                + p["bn_bias"][None, :, None, None])

    x_flat = jnp.transpose(x, (0, 2, 1, 3)).reshape(N, T, D * V)
    x_flat = x_flat + p["pe"][None]
    x_ndtv = jnp.transpose(x_flat.reshape(N, T, D, V), (0, 2, 1, 3))

    mask = jnp.triu(jnp.ones((T, T), bool), k=1)

    outs = []
    for h in range(H):
        def emb(w, b):
            y = jnp.einsum("cd,ndtv->nctv", w[h], x_ndtv) + b[h][None, :, None, None]
            return jnp.transpose(y, (0, 2, 1, 3)).reshape(N, T, ic * V)
        q, k, v = emb(p["wq"], p["bq"]), emb(p["wk"], p["bk"]), emb(p["wv"], p["bv"])
        s = jnp.einsum("ntd,nsd->nts", q, k) / math.sqrt(ic * V)
        s = jnp.where(mask[None], -1e9, s)
        a = jax.nn.softmax(s, axis=-1)
        outs.append(jnp.einsum("nts,nsd->ntd", a, v))

    z = jnp.concatenate(outs, axis=2)
    z_ndtv = jnp.transpose(z.reshape(N, T, D, V), (0, 2, 1, 3))
    z_ndtv = bn(z_ndtv) + x_ndtv
    f = jnp.einsum("cd,ndtv->nctv", p["wf"], z_ndtv) + p["bf"][None, :, None, None]
    z_ndtv = jnp.maximum(f, 0.0) + x_ndtv
    return bn(z_ndtv)


if __name__ == "__main__":
    # Small shapes consistent with the module: N=4 batch, D=8 channels (H=2
    # heads, inter_channels=4), T=8 frames, V=16 joints (A is a V x V adjacency).
    N, D, T, V, H = 4, 8, 8, 16, 2

    key = jax.random.PRNGKey(0)
    kx, kp = jax.random.split(key)
    x = jax.random.normal(kx, (N, D, T, V), jnp.float32)
    params = init_params(kp, D, H, T, V)

    z, cls_tokens = mhta_forward(x, params)
    z = jax.block_until_ready(z)

    ref = reference_forward(x, params)
    assert z.shape == (N, D, T, V)
    assert cls_tokens is None
    # bf16 MXU inputs (f32 accumulation / f32 softmax) + approx reciprocal vs
    # f32 reference: tolerance loosened accordingly.
    err = jnp.max(jnp.abs(z - ref))
    assert jnp.allclose(z, ref, atol=5e-2, rtol=5e-2), f"max abs err {err}"

    print("KERNEL_OK")
</pallas_src>

<mosaic_0001>
module attributes {stable_mosaic.version = 11 : i64} {
  func.func @mhta_kernel(%arg0: i32, %arg1: memref<4x8x128xf32, #tpu.memory_space<vmem>>, %arg2: memref<8x128xf32, #tpu.memory_space<vmem>>, %arg3: memref<128x384xbf16, #tpu.memory_space<vmem>>, %arg4: memref<1x384xf32, #tpu.memory_space<vmem>>, %arg5: memref<128x128xbf16, #tpu.memory_space<vmem>>, %arg6: memref<1x128xf32, #tpu.memory_space<vmem>>, %arg7: memref<1x128xf32, #tpu.memory_space<vmem>>, %arg8: memref<1x128xf32, #tpu.memory_space<vmem>>, %arg9: memref<4x8x128xf32, #tpu.memory_space<vmem>>) attributes {dimension_semantics = [#tpu.dimension_semantics<parallel>], iteration_bounds = array<i64: 1>, scalar_prefetch = 0 : i64, scratch_operands = 0 : i64, tpu.core_type = #tpu.core_type<tc>, window_params = [{transform_indices = @transform_0, window_bounds = array<i64: 4, 8, 128>}, {pipeline_mode = #tpu.pipeline_mode<synchronous>, transform_indices = @transform_1, window_bounds = array<i64: 8, 128>}, {pipeline_mode = #tpu.pipeline_mode<synchronous>, transform_indices = @transform_2, window_bounds = array<i64: 128, 384>}, {pipeline_mode = #tpu.pipeline_mode<synchronous>, transform_indices = @transform_3, window_bounds = array<i64: 1, 384>}, {pipeline_mode = #tpu.pipeline_mode<synchronous>, transform_indices = @transform_4, window_bounds = array<i64: 128, 128>}, {pipeline_mode = #tpu.pipeline_mode<synchronous>, transform_indices = @transform_5, window_bounds = array<i64: 1, 128>}, {pipeline_mode = #tpu.pipeline_mode<synchronous>, transform_indices = @transform_6, window_bounds = array<i64: 1, 128>}, {pipeline_mode = #tpu.pipeline_mode<synchronous>, transform_indices = @transform_7, window_bounds = array<i64: 1, 128>}, {transform_indices = @transform_8, window_bounds = array<i64: 4, 8, 128>}]} {
    %c0 = arith.constant 0 : index
    %c0_0 = arith.constant 0 : index
    %c0_1 = arith.constant 0 : index
    %0 = vector.load %arg1[%c0, %c0_0, %c0_1] : memref<4x8x128xf32, #tpu.memory_space<vmem>>, vector<4x8x128xf32>
    %c0_2 = arith.constant 0 : index
    %c0_3 = arith.constant 0 : index
    %1 = vector.load %arg2[%c0_2, %c0_3] : memref<8x128xf32, #tpu.memory_space<vmem>>, vector<8x128xf32>
    %2 = vector.shape_cast %1 : vector<8x128xf32> to vector<1x8x128xf32>
    %3 = vector.broadcast %2 : vector<1x8x128xf32> to vector<4x8x128xf32>
    %4 = arith.addf %0, %3 : vector<4x8x128xf32>
    %5 = vector.shape_cast %4 : vector<4x8x128xf32> to vector<32x128xf32>
    %6 = arith.truncf %5 : vector<32x128xf32> to vector<32x128xbf16>
    %c0_4 = arith.constant 0 : index
    %c0_5 = arith.constant 0 : index
    %7 = vector.load %arg3[%c0_4, %c0_5] : memref<128x384xbf16, #tpu.memory_space<vmem>>, vector<128x384xbf16>
    %cst = arith.constant dense<0.000000e+00> : vector<32x384xf32>
    %8 = tpu.matmul %6, %7, %cst {dimension_numbers = #tpu.dot_dimension_numbers<[1], [0], [0], [1], [0, 0, 1, 1], [], []>} : vector<32x128xbf16>, vector<128x384xbf16>, vector<32x384xf32> -> vector<32x384xf32>
    %c0_6 = arith.constant 0 : index
    %c0_7 = arith.constant 0 : index
    %9 = vector.load %arg4[%c0_6, %c0_7] : memref<1x384xf32, #tpu.memory_space<vmem>>, vector<1x384xf32>
    %10 = vector.broadcast %9 : vector<1x384xf32> to vector<32x384xf32>
    %11 = arith.addf %8, %10 : vector<32x384xf32>
    %12 = vector.extract_strided_slice %11 {offsets = [0, 0], sizes = [32, 128], strides = [1, 1]} : vector<32x384xf32> to vector<32x128xf32>
    %13 = vector.shape_cast %12 : vector<32x128xf32> to vector<4x8x2x64xf32>
    %14 = tpu.transpose %13, [0, 2, 1, 3] : vector<4x8x2x64xf32> -> vector<4x2x8x64xf32>
    %15 = vector.shape_cast %14 : vector<4x2x8x64xf32> to vector<8x8x64xf32>
    %16 = arith.truncf %15 : vector<8x8x64xf32> to vector<8x8x64xbf16>
    %17 = vector.extract_strided_slice %11 {offsets = [0, 128], sizes = [32, 128], strides = [1, 1]} : vector<32x384xf32> to vector<32x128xf32>
    %18 = vector.shape_cast %17 : vector<32x128xf32> to vector<4x8x2x64xf32>
    %19 = tpu.transpose %18, [0, 2, 1, 3] : vector<4x8x2x64xf32> -> vector<4x2x8x64xf32>
    %20 = vector.shape_cast %19 : vector<4x2x8x64xf32> to vector<8x8x64xf32>
    %21 = arith.truncf %20 : vector<8x8x64xf32> to vector<8x8x64xbf16>
    %22 = vector.extract_strided_slice %11 {offsets = [0, 256], sizes = [32, 128], strides = [1, 1]} : vector<32x384xf32> to vector<32x128xf32>
    %23 = vector.shape_cast %22 : vector<32x128xf32> to vector<4x8x2x64xf32>
    %24 = tpu.transpose %23, [0, 2, 1, 3] : vector<4x8x2x64xf32> -> vector<4x2x8x64xf32>
    %25 = vector.shape_cast %24 : vector<4x2x8x64xf32> to vector<8x8x64xf32>
    %26 = arith.truncf %25 : vector<8x8x64xf32> to vector<8x8x64xbf16>
    %27 = tpu.iota {dimensions = array<i32: 0>} : vector<8x8xi32>
    %28 = tpu.iota {dimensions = array<i32: 1>} : vector<8x8xi32>
    %29 = arith.cmpi sgt, %28, %27 : vector<8x8xi32>
    %cst_8 = arith.constant -1.000000e+09 : f32
    %cst_9 = arith.constant 0.000000e+00 : f32
    %30 = vector.broadcast %cst_8 : f32 to vector<8x8xf32>
    %31 = vector.broadcast %cst_9 : f32 to vector<8x8xf32>
    %32 = arith.select %29, %30, %31 : vector<8x8xi1>, vector<8x8xf32>
    "tpu.trace_start"() <{level = 10 : i32, message = "btd,bsd->bts"}> : () -> ()
    %cst_10 = arith.constant dense<0.000000e+00> : vector<8x8x8xf32>
    %33 = tpu.matmul %16, %21, %cst_10 {dimension_numbers = #tpu.dot_dimension_numbers<[2], [2], [1], [1], [0, 0, 0, 1, 1, 1], [0], [0]>} : vector<8x8x64xbf16>, vector<8x8x64xbf16>, vector<8x8x8xf32> -> vector<8x8x8xf32>
    "tpu.trace_stop"() : () -> ()
    %34 = vector.shape_cast %32 : vector<8x8xf32> to vector<1x8x8xf32>
    %35 = vector.broadcast %34 : vector<1x8x8xf32> to vector<8x8x8xf32>
    %36 = arith.addf %33, %35 : vector<8x8x8xf32>
    %cst_11 = arith.constant dense<0xFF800000> : vector<8x8xf32>
    %37 = vector.multi_reduction <maximumf>, %36, %cst_11 [2] : vector<8x8x8xf32> to vector<8x8xf32>
    %38 = vector.shape_cast %37 : vector<8x8xf32> to vector<8x8x1xf32>
    %39 = vector.broadcast %38 : vector<8x8x1xf32> to vector<8x8x8xf32>
    %40 = arith.subf %36, %39 : vector<8x8x8xf32>
    %41 = math.exp %40 : vector<8x8x8xf32>
    %cst_12 = arith.constant dense<0.000000e+00> : vector<8x8xf32>
    %42 = vector.multi_reduction <add>, %41, %cst_12 [2] : vector<8x8x8xf32> to vector<8x8xf32>
    %43 = vector.shape_cast %42 : vector<8x8xf32> to vector<8x8x1xf32>
    %44 = tpu.reciprocal %43 {approx = true} : vector<8x8x1xf32> -> vector<8x8x1xf32>
    %45 = arith.truncf %41 : vector<8x8x8xf32> to vector<8x8x8xbf16>
    "tpu.trace_start"() <{level = 10 : i32, message = "bts,bsd->btd"}> : () -> ()
    %cst_13 = arith.constant dense<0.000000e+00> : vector<8x8x64xf32>
    %46 = tpu.matmul %45, %26, %cst_13 {dimension_numbers = #tpu.dot_dimension_numbers<[2], [1], [1], [2], [0, 0, 0, 1, 1, 2], [0], [0]>} : vector<8x8x8xbf16>, vector<8x8x64xbf16>, vector<8x8x64xf32> -> vector<8x8x64xf32>
    "tpu.trace_stop"() : () -> ()
    %47 = vector.broadcast %44 : vector<8x8x1xf32> to vector<8x8x64xf32>
    %48 = arith.mulf %46, %47 : vector<8x8x64xf32>
    %49 = vector.shape_cast %48 : vector<8x8x64xf32> to vector<4x2x8x64xf32>
    %50 = tpu.transpose %49, [0, 2, 1, 3] : vector<4x2x8x64xf32> -> vector<4x8x2x64xf32>
    %51 = vector.shape_cast %50 : vector<4x8x2x64xf32> to vector<32x128xf32>
    %c0_14 = arith.constant 0 : index
    %c0_15 = arith.constant 0 : index
    %52 = vector.load %arg7[%c0_14, %c0_15] : memref<1x128xf32, #tpu.memory_space<vmem>>, vector<1x128xf32>
    %c0_16 = arith.constant 0 : index
    %c0_17 = arith.constant 0 : index
    %53 = vector.load %arg8[%c0_16, %c0_17] : memref<1x128xf32, #tpu.memory_space<vmem>>, vector<1x128xf32>
    %54 = vector.broadcast %53 : vector<1x128xf32> to vector<32x128xf32>
    %55 = arith.addf %51, %54 : vector<32x128xf32>
    %56 = arith.addf %55, %5 : vector<32x128xf32>
    %57 = arith.truncf %56 : vector<32x128xf32> to vector<32x128xbf16>
    %c0_18 = arith.constant 0 : index
    %c0_19 = arith.constant 0 : index
    %58 = vector.load %arg5[%c0_18, %c0_19] : memref<128x128xbf16, #tpu.memory_space<vmem>>, vector<128x128xbf16>
    %cst_20 = arith.constant dense<0.000000e+00> : vector<32x128xf32>
    %59 = tpu.matmul %57, %58, %cst_20 {dimension_numbers = #tpu.dot_dimension_numbers<[1], [0], [0], [1], [0, 0, 1, 1], [], []>} : vector<32x128xbf16>, vector<128x128xbf16>, vector<32x128xf32> -> vector<32x128xf32>
    %c0_21 = arith.constant 0 : index
    %c0_22 = arith.constant 0 : index
    %60 = vector.load %arg6[%c0_21, %c0_22] : memref<1x128xf32, #tpu.memory_space<vmem>>, vector<1x128xf32>
    %61 = vector.broadcast %60 : vector<1x128xf32> to vector<32x128xf32>
    %62 = arith.addf %59, %61 : vector<32x128xf32>
    %cst_23 = arith.constant 0.000000e+00 : f32
    %63 = vector.broadcast %cst_23 : f32 to vector<32x128xf32>
    %64 = arith.maximumf %62, %63 : vector<32x128xf32>
    %65 = vector.broadcast %52 : vector<1x128xf32> to vector<32x128xf32>
    %66 = arith.mulf %64, %65 : vector<32x128xf32>
    %67 = vector.broadcast %52 : vector<1x128xf32> to vector<32x128xf32>
    %68 = arith.mulf %5, %67 : vector<32x128xf32>
    %69 = vector.broadcast %53 : vector<1x128xf32> to vector<32x128xf32>
    %70 = arith.addf %68, %69 : vector<32x128xf32>
    %71 = arith.addf %66, %70 : vector<32x128xf32>
    %72 = vector.shape_cast %71 : vector<32x128xf32> to vector<4x8x128xf32>
    %c0_24 = arith.constant 0 : index
    %c0_25 = arith.constant 0 : index
    %c0_26 = arith.constant 0 : index
    %73 = vector.load %arg9[%c0_24, %c0_25, %c0_26] : memref<4x8x128xf32, #tpu.memory_space<vmem>>, vector<4x8x128xf32>
    tpu.vector_store %arg9[%c0_24, %c0_25, %c0_26], %72 {strides = array<i32>} : memref<4x8x128xf32, #tpu.memory_space<vmem>>, vector<4x8x128xf32>,
    return
  }
  func.func @transform_0(%arg0: i32) -> (i32, i32, i32) {
    %c0_i32 = arith.constant 0 : i32
    %c0_i32_0 = arith.constant 0 : i32
    %c0_i32_1 = arith.constant 0 : i32
    return %arg0, %c0_i32, %c0_i32_0 : i32, i32, i32
  }
  func.func @transform_1(%arg0: i32) -> (i32, i32) {
    %c0_i32 = arith.constant 0 : i32
    %c0_i32_0 = arith.constant 0 : i32
    %c0_i32_1 = arith.constant 0 : i32
    return %c0_i32, %c0_i32_0 : i32, i32
  }
  func.func @transform_2(%arg0: i32) -> (i32, i32) {
    %c0_i32 = arith.constant 0 : i32
    %c0_i32_0 = arith.constant 0 : i32
    %c0_i32_1 = arith.constant 0 : i32
    return %c0_i32, %c0_i32_0 : i32, i32
  }
  func.func @transform_3(%arg0: i32) -> (i32, i32) {
    %c0_i32 = arith.constant 0 : i32
    %c0_i32_0 = arith.constant 0 : i32
    %c0_i32_1 = arith.constant 0 : i32
    return %c0_i32, %c0_i32_0 : i32, i32
  }
  func.func @transform_4(%arg0: i32) -> (i32, i32) {
    %c0_i32 = arith.constant 0 : i32
    %c0_i32_0 = arith.constant 0 : i32
    %c0_i32_1 = arith.constant 0 : i32
    return %c0_i32, %c0_i32_0 : i32, i32
  }
  func.func @transform_5(%arg0: i32) -> (i32, i32) {
    %c0_i32 = arith.constant 0 : i32
    %c0_i32_0 = arith.constant 0 : i32
    %c0_i32_1 = arith.constant 0 : i32
    return %c0_i32, %c0_i32_0 : i32, i32
  }
  func.func @transform_6(%arg0: i32) -> (i32, i32) {
    %c0_i32 = arith.constant 0 : i32
    %c0_i32_0 = arith.constant 0 : i32
    %c0_i32_1 = arith.constant 0 : i32
    return %c0_i32, %c0_i32_0 : i32, i32
  }
  func.func @transform_7(%arg0: i32) -> (i32, i32) {
    %c0_i32 = arith.constant 0 : i32
    %c0_i32_0 = arith.constant 0 : i32
    %c0_i32_1 = arith.constant 0 : i32
    return %c0_i32, %c0_i32_0 : i32, i32
  }
  func.func @transform_8(%arg0: i32) -> (i32, i32, i32) {
    %c0_i32 = arith.constant 0 : i32
    %c0_i32_0 = arith.constant 0 : i32
    %c0_i32_1 = arith.constant 0 : i32
    return %arg0, %c0_i32, %c0_i32_0 : i32, i32, i32
  }
}

</mosaic_0001>

<bundles_post_ra>
// kernel: tpu_custom_call.1
= control target key start
LH: loop header
LB: loop body
LE: loop exit
PB: predicated region body
PF: predicated region fallthrough
CT: control target
= control target key end

     0   :  { %13 = vsyncpa [#allocation3], 0  ;;  %s4574_s0 = inlined_call_operand.hbm [shape: f32[4,8,128], index: 0, kind: input, shape index: {}]   ;;  %s4575_s1 = inlined_call_operand.hbm [shape: f32[8,128], index: 1, kind: input, shape index: {}]   ;;  %s4576_s2 = inlined_call_operand.hbm [shape: bf16[128,384], index: 2, kind: input, shape index: {}]   ;;  %s4577_s3 = inlined_call_operand.vmem [shape: f32[1,384], index: 3, kind: input, shape index: {}]   ;;  %s4578_s4 = inlined_call_operand.hbm [shape: bf16[128,128], index: 4, kind: input, shape index: {}]   ;;  %s4579_s5 = inlined_call_operand.vmem [shape: f32[1,128], index: 5, kind: input, shape index: {}]   ;;  %s4580_s6 = inlined_call_operand.vmem [shape: f32[1,128], index: 6, kind: input, shape index: {}]   ;;  %s4581_s7 = inlined_call_operand.vmem [shape: f32[1,128], index: 7, kind: input, shape index: {}]   ;;  %s4582_s8 = inlined_call_operand.hbm [shape: f32[4,8,128], index: 8, kind: output, shape index: {}]  }
   0x1   :  { %14 = vsyncpa [#allocation6], 0 }
   0x2   :  { %15 = vsyncpa [#allocation9], 0 }
   0x3   :  { %16 = vsyncpa [#allocation4], 0  ;;  %s3827_s27 = smov [#allocation5]   ;;  %s3828_s29 = smov [#allocation2]  }
   0x4   :  { %s35_s28 = sshll.u32 %s3827_s27, 4  ;;  %s22_s30 = sshll.u32 %s3828_s29, 4  ;;  %s36_s28 = int_to_ptr.vmem [resolvable:$true] %s35_s28  ;;  %s3888_s30 = int_to_ptr.vmem [resolvable:$true] %s22_s30 }
   0x5   :  { %s3709_s11 = scalar_lea.hbm %s4575_s1, 128 }
   0x6   :  { %p3710_p0 = scmp.ne.s32.totalorder %s4575_s1, %s3709_s11  ;;  %p3713_p1 = scmp.lt.u32.totalorder %s3709_s11, %s4575_s1 }
   0x8   :  { %p3715_p2 = pnand %p3713_p1, %p3710_p0 }
   0xa   :  { %3718 = shalt.err (!%p3715_p2)
}
   0xb   :  { %s3719_s16 = scalar_lea.vmem %s36_s28, 128  ;;  %p3724_p4 = scmp.lt.s32.totalorder %s36_s28, %s36_s28 }
   0xc   :  { %p3720_p3 = scmp.ne.s32.totalorder %s36_s28, %s3719_s16  ;;  %p3725_p5 = scmp.lt.s32.totalorder %s3719_s16, %s3719_s16 }
   0xe   :  { %p3726_p6 = por %p3725_p5, %p3724_p4 }
  0x10   :  { %p3727_p7 = pnand %p3726_p6, %p3720_p3 }
  0x12   :  { %3730 = shalt.err (!%p3727_p7)
}
  0x13   :  { %38 = dma.hbm_to_vmem [thread:$0]  %s4575_s1, 128, %s36_s28, [#allocation6]  }
  0x14   :  { %s3731_s21 = scalar_lea.hbm %s4574_s0, 512 }
  0x15   :  { %p3732_p8 = scmp.ne.s32.totalorder %s4574_s0, %s3731_s21  ;;  %p3735_p9 = scmp.lt.u32.totalorder %s3731_s21, %s4574_s0 }
  0x17   :  { %p3737_p10 = pnand %p3735_p9, %p3732_p8 }
  0x19   :  { %3740 = shalt.err (!%p3737_p10)
}
  0x1a   :  { %s3741_s26 = scalar_lea.vmem %s3888_s30, 512  ;;  %p3746_p12 = scmp.lt.s32.totalorder %s3888_s30, %s3888_s30 }
  0x1b   :  { %p3742_p11 = scmp.ne.s32.totalorder %s3888_s30, %s3741_s26  ;;  %p3747_p13 = scmp.lt.s32.totalorder %s3741_s26, %s3741_s26 }
  0x1d   :  { %p3748_p0 = por %p3747_p13, %p3746_p12 }
  0x1f   :  { %p3749_p1 = pnand %p3748_p0, %p3742_p11 }
  0x21   :  { %3752 = shalt.err (!%p3749_p1)
}
  0x22   :  { %s3829_s1 = smov 128   ;;  %s3830_s27 = smov 8  }
  0x23   :  { %28 = dma.hbm_to_vmem [thread:$0]  %s4574_s0, 512, %s3888_s30, [#allocation3], %s3829_s1, %s3829_s1, %s3830_s27  }
  0x24   :  { %s3831_s9 = smov [#allocation7]   ;;  %s3753_s13 = scalar_lea.hbm %s4576_s2, 3072 }
  0x25   :  { %s44_s10 = sshll.u32 %s3831_s9, 4  ;;  %p3754_p2 = scmp.ne.s32.totalorder %s4576_s2, %s3753_s13  ;;  %s45_s10 = int_to_ptr.vmem [resolvable:$true] %s44_s10 }
  0x26   :  { %p3757_p3 = scmp.lt.u32.totalorder %s3753_s13, %s4576_s2 }
  0x28   :  { %p3759_p4 = pnand %p3757_p3, %p3754_p2 }
  0x2a   :  { %3762 = shalt.err (!%p3759_p4)
}
  0x2b   :  { %s3763_s18 = scalar_lea.vmem %s45_s10, 3072  ;;  %p3768_p6 = scmp.lt.s32.totalorder %s45_s10, %s45_s10 }
  0x2c   :  { %p3764_p5 = scmp.ne.s32.totalorder %s45_s10, %s3763_s18  ;;  %p3769_p7 = scmp.lt.s32.totalorder %s3763_s18, %s3763_s18 }
  0x2e   :  { %p3770_p8 = por %p3769_p7, %p3768_p6 }
  0x30   :  { %p3771_p9 = pnand %p3770_p8, %p3764_p5 }
  0x32   :  { %3774 = shalt.err (!%p3771_p9)
}
  0x33   :  { %s3832_s0 = smov 192   ;;  %s3833_s30 = smov 12  }
  0x34   :  { %50 = dma.hbm_to_vmem [thread:$0]  %s4576_s2, 3072, %s45_s10, [#allocation6], %s3832_s0, %s3832_s0, %s3833_s30  }
  0x35   :  { %s3834_s21 = smov [#allocation8]   ;;  %s3775_s25 = scalar_lea.hbm %s4578_s4, 1024 }
  0x36   :  { %s58_s22 = sshll.u32 %s3834_s21, 4  ;;  %p3776_p10 = scmp.ne.s32.totalorder %s4578_s4, %s3775_s25  ;;  %s59_s22 = int_to_ptr.vmem [resolvable:$true] %s58_s22 }
  0x37   :  { %p3779_p11 = scmp.lt.u32.totalorder %s3775_s25, %s4578_s4 }
  0x39   :  { %p3781_p12 = pnand %p3779_p11, %p3776_p10 }
  0x3b   :  { %3784 = shalt.err (!%p3781_p12)
}
  0x3c   :  { %s3785_s11 = scalar_lea.vmem %s59_s22, 1024  ;;  %p3790_p0 = scmp.lt.s32.totalorder %s59_s22, %s59_s22 }
  0x3d   :  { %p3786_p13 = scmp.ne.s32.totalorder %s59_s22, %s3785_s11  ;;  %p3791_p1 = scmp.lt.s32.totalorder %s3785_s11, %s3785_s11 }
  0x3f   :  { %p3792_p2 = por %p3791_p1, %p3790_p0 }
  0x41   :  { %p3793_p3 = pnand %p3792_p2, %p3786_p13 }
  0x43   :  { %3796 = shalt.err (!%p3793_p3)
}
  0x44   :  { %s3835_s2 = smov 64   ;;  %s3836_s10 = smov 4  }
  0x45   :  { %64 = dma.hbm_to_vmem [thread:$0]  %s4578_s4, 1024, %s59_s22, [#allocation9], %s3835_s2, %s3835_s2, %s3836_s10  }
  0x46   :  { %3819 = dma.done.wait [#allocation3], 512  }
  0x47   :  { %3820 = vsyncadd [#allocation3], 4294966784 }
  0x48   :  { %3821 = dma.done.wait [#allocation6], 3200  }
  0x49   :  { %3822 = vsyncadd [#allocation6], 4294964096 }
  0x4a   :  { %3823 = dma.done.wait [#allocation9], 1024  }
  0x4b   :  { %3824 = vsyncadd [#allocation9], 4294966272  ;;  %v3837_v0 = vmov 0   ;;  %v3637_v1 = vld [vmem:[#allocation7 + $0x4] ss:$12 sps:$4 sm:$0xff]   ;;  %v84_v8 = vld [vmem:[#allocation2] sm:$0xff]  ;;  %v129_v37 = vlaneseq }
  0x4c   :  { %304 = vmatprep.mubr.bf16.mxu0 %v3837_v0  ;;  %v3639_v2 = vld [vmem:[#allocation7] ss:$12 sps:$4 sm:$0xff]   ;;  %272 = vmatprep.subr.bf16.mxu0 %v3637_v1  ;;  %v3640_v3 = vld [vmem:[#allocation7 + $0x1c] ss:$12 sps:$4 sm:$0xff]   ;;  %v3642_v4 = vld [vmem:[#allocation7 + $0x18] ss:$12 sps:$4 sm:$0xff]  }
  0x4d   :  { %273 = vmatpush1.bf16.msra.mxu0 %v3639_v2  ;;  %v3643_v5 = vld [vmem:[#allocation7 + $0x34] ss:$12 sps:$4 sm:$0xff]   ;;  %v3645_v6 = vld [vmem:[#allocation7 + $0x30] ss:$12 sps:$4 sm:$0xff]   ;;  %v3646_v7 = vld [vmem:[#allocation7 + $0x4c] ss:$12 sps:$4 sm:$0xff]  }
  0x4e   :  { %274 = vmatprep.subr.bf16.mxu0 %v3640_v3  ;;  %v3648_v9 = vld [vmem:[#allocation7 + $0x48] ss:$12 sps:$4 sm:$0xff]   ;;  %v85_v10 = vld [vmem:[#allocation2 + $0x8] sm:$0xff]  ;;  %v88_v11 = vld [vmem:[#allocation5] sm:$0xff]  ;;  %v3838_v36 = vmov 0.0   ;;  %v3965_v38 = vshrl.u32 %v129_v37, 7 }
  0x4f   :  { %v3649_v12 = vld [vmem:[#allocation7 + $0x64] ss:$12 sps:$4 sm:$0xff]   ;;  %v3949_v13 = vadd.f32 %v88_v11, %v84_v8  ;;  %v3951_v14 = vadd.f32 %v88_v11, %v85_v10  ;;  %v3661_v15 = vld [vmem:[#allocation7 + $0x8] ss:$12 sps:$4 sm:$0xff]   ;;  %v3662_v16 = vld [vmem:[#allocation7 + $0x20] ss:$12 sps:$4 sm:$0xff]  }
  0x50   :  { %v3651_v17 = vld [vmem:[#allocation7 + $0x60] ss:$12 sps:$4 sm:$0xff]   ;;  %3485 = vmatprep.subr.bf16.mxu1 %v3661_v15  ;;  %v3652_v19 = vld [vmem:[#allocation7 + $0x7c] ss:$12 sps:$4 sm:$0xff]   ;;  %v3663_v20 = vld [vmem:[#allocation7 + $0x38] ss:$12 sps:$4 sm:$0xff]  }
  0x51   :  { %275 = vmatpush1.bf16.msra.mxu0 %v3642_v4  ;;  %v93_v18 = vpack.c.bf16 %v3951_v14, %v3949_v13  ;;  %3486 = vmatpush3.bf16.msra.mxu1 %v3661_v15  ;;  %v3654_v21 = vld [vmem:[#allocation7 + $0x78] ss:$12 sps:$4 sm:$0xff]   ;;  %v3655_v22 = vld [vmem:[#allocation7 + $0x94] ss:$12 sps:$4 sm:$0xff]   ;;  %v3664_v23 = vld [vmem:[#allocation7 + $0x50] ss:$12 sps:$4 sm:$0xff]  }
  0x52   :  { %276 = vmatprep.subr.bf16.mxu0 %v3643_v5  ;;  %3487 = vmatprep.subr.bf16.mxu1 %v3662_v16  ;;  %v3657_v24 = vld [vmem:[#allocation7 + $0x90] ss:$12 sps:$4 sm:$0xff]   ;;  %v3658_v25 = vld [vmem:[#allocation7 + $0xac] ss:$12 sps:$4 sm:$0xff]   ;;  %v3665_v26 = vld [vmem:[#allocation7 + $0x68] ss:$12 sps:$4 sm:$0xff]  }
  0x53   :  { %3501 = vmatprep.mubr.bf16.mxu1 %v93_v18  ;;  %v3660_v27 = vld [vmem:[#allocation7 + $0xa8] ss:$12 sps:$4 sm:$0xff]   ;;  %v3666_v28 = vld [vmem:[#allocation7 + $0x80] ss:$12 sps:$4 sm:$0xff]   ;;  %v3667_v31 = vld [vmem:[#allocation7 + $0x98] ss:$12 sps:$4 sm:$0xff]  }
  0x54   :  { %v86_v29 = vld [vmem:[#allocation2 + $0x10] sm:$0xff]  ;;  %v87_v30 = vld [vmem:[#allocation2 + $0x18] sm:$0xff]  ;;  %v135_v39 = vsub.s32 1, %v3965_v38  ;;  %v127_v40 = vld [vmem:[%s4577_s3] sm:$0x7]  ;;  %v131_v41 = vsub.s32 0, %v3965_v38 }
  0x55   :  { %277 = vmatpush1.bf16.msra.mxu0 %v3645_v6  ;;  %3488 = vmatpush3.bf16.msra.mxu1 %v3662_v16  ;;  %v3955_v32 = vadd.f32 %v88_v11, %v86_v29  ;;  %v3957_v33 = vadd.f32 %v88_v11, %v87_v30  ;;  %v3668_v35 = vld [vmem:[#allocation7 + $0xb0] ss:$12 sps:$4 sm:$0xff]   ;;  %vm3839_vm0 = vmmov 0   ;;  %v139_v60 = vsub.s32 2, %v3965_v38 }
  0x56   :  { %278 = vmatprep.subr.bf16.mxu0 %v3646_v7  ;;  %3489 = vmatprep.subr.bf16.mxu1 %v3663_v20  ;;  %v136_v42 = vrot.slane %v127_v40, %v135_v39  ;;  %v132_v45 = vrot.slane %v127_v40, %v131_v41  ;;  %v3840_v6 = vmov 1983009808   ;;  %vm1844_vm1 = vcmask 523264  }
  0x57   :  { %v94_v34 = vpack.c.bf16 %v3957_v33, %v3955_v32  ;;  %v140_v61 = vrot.slane %v127_v40, %v139_v60  ;;  %v392_v7 = vunpack.c.l.s4 %v3840_v6  ;;  %vm2305_vm2 = vcmask 1043456  }
  0x58   :  { %vm2213_vm4 = vcmask 64512  }
  0x59   :  { %279 = vmatpush1.bf16.msra.mxu0 %v3648_v9  ;;  %3490 = vmatpush3.bf16.msra.mxu1 %v3663_v20  ;;  %v393_v8 = vunpack.c.0.s8 %v392_v7  ;;  %v3841_v9 = vmov 1934713408  }
  0x5a   :  { %280 = vmatprep.subr.bf16.mxu0 %v3649_v12  ;;  %3491 = vmatprep.subr.bf16.mxu1 %v3664_v23  ;;  %v423_v10 = vunpack.c.l.s4 %v3841_v9 }
  0x5b   :  { %v4007_v11 = vsub.s32 %v393_v8, %v3965_v38 }
  0x5c   :  { %v424_v12 = vunpack.c.0.s8 %v423_v10 }
  0x5d   :  { %281 = vmatpush1.bf16.msra.mxu0 %v3651_v17  ;;  %3492 = vmatpush3.bf16.msra.mxu1 %v3664_v23 }
  0x5e   :  { %282 = vmatprep.subr.bf16.mxu0 %v3652_v19  ;;  %3493 = vmatprep.subr.bf16.mxu1 %v3665_v26 }
  0x61   :  { %283 = vmatpush1.bf16.msra.mxu0 %v3654_v21  ;;  %3494 = vmatpush3.bf16.msra.mxu1 %v3665_v26 }
  0x62   :  { %284 = vmatprep.subr.bf16.mxu0 %v3655_v22  ;;  %3495 = vmatprep.subr.bf16.mxu1 %v3666_v28  ;;  %v4016_v22 = vsub.s32 %v424_v12, %v3965_v38 }
  0x65   :  { %285 = vmatpush1.bf16.msra.mxu0 %v3657_v24  ;;  %3496 = vmatpush3.bf16.msra.mxu1 %v3666_v28 }
  0x66   :  { %286 = vmatprep.subr.bf16.mxu0 %v3658_v25  ;;  %3497 = vmatprep.subr.bf16.mxu1 %v3667_v31 }
  0x69   :  { %287 = vmatpush1.bf16.msra.mxu0 %v3660_v27  ;;  %3498 = vmatpush3.bf16.msra.mxu1 %v3667_v31 }
  0x6a   :  { %3499 = vmatprep.subr.bf16.mxu1 %v3668_v35  ;;  %3505 = vmatprep.subr.bf16.mxu0 %v3838_v36 }
  0x6c   :  { %305 = vmatmul.mubr.bf16.vlgmr.msra.gmra.mrb[0].mxu0 %v93_v18 }
  0x6d   :  { %314 = vmatprep.mubr.bf16.mxu0 %v3837_v0  ;;  %3500 = vmatpush3.bf16.msra.mxu1 %v3668_v35 }
  0x6e   :  { %3517 = vmatprep.subr.bf16.mxu1 %v3838_v36 }
  0x70   :  { %3502 = vmatmul.mubr.bf16.vlgmr.msra.gmra.mrb[0].mxu1 %v94_v34 }
  0x71   :  { %3519 = vmatprep.mubr.msk.bf16.mxu1 %vm3839_vm0, %v3838_v36 }
  0x74   :  { %315 = vmatmul.mubr.bf16.gmra.mrb[4].mxu0 %v94_v34 }
  0x75   :  { %3507 = vmatprep.mubr.msk.bf16.mxu0 %vm3839_vm0, %v3838_v36 }
 0x13f   :  { %v306_v43 = vpop.f32.mrb[0].mxu0 }
 0x140   :  { %v308_v44 = vpop.f32.mrb[1].mxu0  ;;  %v307_v50 = vadd.f32 %v306_v43, %v132_v45 }
 0x141   :  { %v309_v46 = vadd.f32 %v308_v44, %v136_v42  ;;  %v310_v47 = vpop.f32.mrb[2].mxu0 }
 0x142   :  { %v312_v48 = vpop.f32.mrb[3].mxu0  ;;  %v311_v51 = vadd.f32 %v310_v47, %v132_v45  ;;  %v390_v16 = vcombine.high %v307_v50, %v3838_v36  ;;  %v397_v25 = vrot.slane %v307_v50, %v4007_v11 }
 0x143   :  { %v313_v49 = vadd.f32 %v312_v48, %v136_v42  ;;  %866 = vrot.lane.b32.xlu0 %v309_v46, %s3835_s2  ;;  %v3503_v62 = vpop.f32.mrb[0].mxu1  ;;  %v878_v17 = vcombine.high %v309_v46, %v3838_v36  ;;  %v885_v20 = vrot.slane %v309_v46, %v4007_v11 }
 0x144   :  { %v3994_v63 = vadd.f32 %v3503_v62, %v140_v61  ;;  %v359_v0 = vpop.f32.mrb[1].mxu1  ;;  %v456_v21 = vcombine.high %v311_v51, %v3838_v36  ;;  %v404_v30 = vrot.slane %v390_v16, %v4007_v11  ;;  %v4024_v34 = vrot.slane %v311_v51, %v4007_v11 }
 0x145   :  { %868 = vrot.lane.b32.xlu1 %v313_v49, %s3835_s2  ;;  %v3996_v1 = vadd.f32 %v359_v0, %v140_v61  ;;  %v3504_v2 = vpop.f32.mrb[2].mxu1  ;;  %v944_v23 = vcombine.high %v313_v49, %v3838_v36  ;;  %v892_v31 = vrot.slane %v878_v17, %v4007_v11  ;;  %v951_v40 = vrot.slane %v313_v49, %v4007_v11 }
 0x146   :  { %v3998_v3 = vadd.f32 %v3504_v2, %v140_v61  ;;  %v362_v4 = vpop.f32.mrb[3].mxu1  ;;  %v4029_v39 = vrot.slane %v456_v21, %v4007_v11 }
 0x147   :  { %v316_v52 = vpop.f32.mrb[4].mxu0  ;;  %378 = vrot.lane.b32.xlu0 %v307_v50, %s3835_s2  ;;  %v4000_v5 = vadd.f32 %v362_v4, %v140_v61  ;;  %v958_v43 = vrot.slane %v944_v23, %v4007_v11 }
 0x148   :  { %v318_v53 = vpop.f32.mrb[5].mxu0  ;;  %v3975_v54 = vadd.f32 %v316_v52, %v132_v45 }
 0x149   :  { %v3977_v55 = vadd.f32 %v318_v53, %v136_v42  ;;  %380 = vrot.lane.b32.xlu1 %v311_v51, %s3835_s2  ;;  %v320_v56 = vpop.f32.mrb[6].mxu0 }
 0x14a   :  { %v322_v57 = vpop.f32.mrb[7].mxu0  ;;  %v321_v59 = vadd.f32 %v320_v56, %v132_v45  ;;  %v522_v35 = vcombine.high %v3975_v54, %v3838_v36  ;;  %v4043_v49 = vrot.slane %v3975_v54, %v4007_v11 }
 0x14b   :  { %870 = vrot.lane.b32.xlu0 %v3977_v55, %s3835_s2  ;;  %v3982_v58 = vadd.f32 %v322_v57, %v136_v42  ;;  %v1010_v41 = vcombine.high %v3977_v55, %v3838_v36  ;;  %v4050_v53 = vrot.slane %v3977_v55, %v4007_v11 }
 0x14c   :  { %v588_v44 = vcombine.high %v321_v59, %v3838_v36  ;;  %v4046_v52 = vrot.slane %v522_v35, %v4007_v11  ;;  %v4053_v56 = vrot.slane %v321_v59, %v4007_v11 }
 0x14d   :  { %382 = vrot.lane.b32.xlu1 %v3975_v54, %s3835_s2  ;;  %v4056_v57 = vrot.slane %v1010_v41, %v4007_v11  ;;  %v1076_v60 = vcombine.high %v3982_v58, %v3838_v36  ;;  %v4062_v54 = vrot.slane %v3982_v58, %v4007_v11 }
 0x14e   :  { %v4066_v62 = vrot.slane %v588_v44, %v4007_v11 }
 0x14f   :  { %872 = vrot.lane.b32.xlu0 %v3982_v58, %s3835_s2 }
 0x151   :  { %384 = vrot.lane.b32.xlu1 %v321_v59, %s3835_s2 }
 0x153   :  { %1354 = vrot.lane.b32.xlu0 %v3996_v1, %s3835_s2 }
 0x155   :  { %1356 = vrot.lane.b32.xlu1 %v4000_v5, %s3835_s2 }
 0x1b5   :  { %v867_v15 = vpop.permute.xlu0 %866 }
 0x1b6   :  { %v893_v18 = vcombine.high %v867_v15, %v3838_v36  ;;  %v900_v19 = vrot.slane %v867_v15, %v4007_v11 }
 0x1b7   :  { %v869_v24 = vpop.permute.xlu1 %868 }
 0x1b8   :  { %v907_v26 = vrot.slane %v893_v18, %v4007_v11  ;;  %v908_v27 = vcombine.low %v885_v20, %v900_v19  ;;  %v909_v28 = vcombine.high %v885_v20, %v900_v19  ;;  %v959_v42 = vcombine.high %v869_v24, %v3838_v36 }
 0x1b9   :  { %v379_v29 = vpop.permute.xlu0 %378  ;;  %v966_v45 = vrot.slane %v869_v24, %v4007_v11  ;;  %v4079_v24 = vrot.slane %v1076_v60, %v4007_v11 }
 0x1ba   :  { %v405_v46 = vcombine.high %v379_v29, %v3838_v36  ;;  %v916_v47 = vrot.slane %v908_v27, %v4016_v22  ;;  %v923_v48 = vrot.slane %v909_v28, %v4016_v22  ;;  %v924_v50 = vcombine.low %v892_v31, %v907_v26 }
 0x1bb   :  { %v925_v51 = vcombine.high %v892_v31, %v907_v26  ;;  %v973_v61 = vrot.slane %v959_v42, %v4007_v11  ;;  %v974_v55 = vcombine.low %v951_v40, %v966_v45  ;;  %v412_v0 = vrot.slane %v379_v29, %v4007_v11  ;;  %v381_v2 = vpop.permute.xlu1 %380 }
 0x1bc   :  { %v419_v59 = vrot.slane %v405_v46, %v4007_v11  ;;  %v932_v4 = vrot.slane %v924_v50, %v4016_v22  ;;  %v1142_v7 = vcombine.low %v916_v47, %v923_v48  ;;  %v975_v8 = vcombine.high %v951_v40, %v966_v45 }
 0x1bd   :  { %v939_v6 = vrot.slane %v925_v51, %v4016_v22  ;;  %v420_v9 = vcombine.low %v397_v25, %v412_v0  ;;  %v421_v58 = vcombine.high %v397_v25, %v412_v0  ;;  %v990_v15 = vcombine.low %v958_v43, %v973_v61  ;;  %v871_v28 = vpop.permute.xlu0 %870 }
 0x1be   :  { %v436_v10 = vcombine.low %v404_v30, %v419_v59  ;;  %v437_v12 = vcombine.high %v404_v30, %v419_v59  ;;  %v991_v16 = vcombine.high %v958_v43, %v973_v61  ;;  %v471_v17 = vcombine.high %v381_v2, %v3838_v36 }
 0x1bf   :  { %v478_v18 = vrot.slane %v381_v2, %v4007_v11  ;;  %v428_v19 = vrot.slane %v420_v9, %v4016_v22  ;;  %v435_v20 = vrot.slane %v421_v58, %v4016_v22  ;;  %v3382_v25 = vcombine.high %v916_v47, %v923_v48 }
 0x1c0   :  { %v444_v21 = vrot.slane %v436_v10, %v4016_v22  ;;  %v451_v23 = vrot.slane %v437_v12, %v4016_v22  ;;  %v982_v26 = vrot.slane %v974_v55, %v4016_v22  ;;  %v989_v27 = vrot.slane %v975_v8, %v4016_v22  ;;  %v383_v10 = vpop.permute.xlu1 %382 }
 0x1c1   :  { %v4084_v29 = vrot.slane %v1142_v7, %v4007_v11  ;;  %v485_v30 = vrot.slane %v471_v17, %v4007_v11  ;;  %v486_v31 = vcombine.low %v4024_v34, %v478_v18  ;;  %v487_v35 = vcombine.high %v4024_v34, %v478_v18 }
 0x1c2   :  { %v1158_v40 = vcombine.low %v932_v4, %v939_v6  ;;  %v998_v41 = vrot.slane %v990_v15, %v4016_v22  ;;  %v654_v42 = vcombine.low %v428_v19, %v435_v20  ;;  %v3374_v43 = vcombine.high %v428_v19, %v435_v20 }
 0x1c3   :  { %v1005_v44 = vrot.slane %v991_v16, %v4016_v22  ;;  %v670_v45 = vcombine.low %v444_v21, %v451_v23  ;;  %v3375_v46 = vcombine.high %v444_v21, %v451_v23  ;;  %v1025_v47 = vcombine.high %v871_v28, %v3838_v36  ;;  %v873_v21 = vpop.permute.xlu0 %872 }
 0x1c4   :  { %v4093_v48 = vrot.slane %v3382_v25, %v4007_v11  ;;  %v3383_v50 = vcombine.high %v932_v4, %v939_v6  ;;  %v1192_v51 = vcombine.low %v982_v26, %v989_v27  ;;  %v3384_v60 = vcombine.high %v982_v26, %v989_v27 }
 0x1c5   :  { %v494_v61 = vrot.slane %v486_v31, %v4016_v22  ;;  %v501_v34 = vrot.slane %v487_v35, %v4016_v22  ;;  %v502_v55 = vcombine.low %v4029_v39, %v485_v30  ;;  %v503_v0 = vcombine.high %v4029_v39, %v485_v30 }
 0x1c6   :  { %v4100_v59 = vrot.slane %v1158_v40, %v4007_v11  ;;  %v661_v2 = vrot.slane %v654_v42, %v4007_v11  ;;  %v669_v7 = vrot.slane %v3374_v43, %v4007_v11  ;;  %v1032_v8 = vrot.slane %v871_v28, %v4007_v11 }
 0x1c7   :  { %v1208_v4 = vcombine.low %v998_v41, %v1005_v44  ;;  %v677_v6 = vrot.slane %v670_v45, %v4007_v11  ;;  %v685_v9 = vrot.slane %v3375_v46, %v4007_v11  ;;  %v1039_v58 = vrot.slane %v1025_v47, %v4007_v11 }
 0x1c8   :  { %v4109_v12 = vrot.slane %v3383_v50, %v4007_v11  ;;  %v4112_v39 = vrot.slane %v1192_v51, %v4007_v11  ;;  %v4115_v15 = vrot.slane %v3384_v60, %v4007_v11  ;;  %v3385_v16 = vcombine.high %v998_v41, %v1005_v44 }
 0x1c9   :  { %v510_v17 = vrot.slane %v502_v55, %v4016_v22  ;;  %v517_v18 = vrot.slane %v503_v0, %v4016_v22  ;;  %v704_v19 = vcombine.low %v494_v61, %v501_v34  ;;  %v3376_v20 = vcombine.high %v494_v61, %v501_v34 }
 0x1ca   :  { %v686_v23 = vcombine.low %v661_v2, %v669_v7  ;;  %v1040_v25 = vcombine.low %v4050_v53, %v1032_v8  ;;  %v1041_v26 = vcombine.high %v4050_v53, %v1032_v8  ;;  %v537_v27 = vcombine.high %v383_v10, %v3838_v36 }
 0x1cb   :  { %v4123_v28 = vrot.slane %v1208_v4, %v4007_v11  ;;  %v694_v30 = vcombine.low %v677_v6, %v685_v9  ;;  %v1056_v31 = vcombine.low %v4056_v57, %v1039_v58  ;;  %v1057_v35 = vcombine.high %v4056_v57, %v1039_v58  ;;  %v385_v4 = vpop.permute.xlu1 %384 }
 0x1cc   :  { %v4128_v40 = vrot.slane %v3385_v16, %v4007_v11  ;;  %v544_v41 = vrot.slane %v383_v10, %v4007_v11  ;;  %v551_v42 = vrot.slane %v537_v27, %v4007_v11  ;;  %v1091_v43 = vcombine.high %v873_v21, %v3838_v36 }
 0x1cd   :  { %v711_v53 = vrot.slane %v704_v19, %v4007_v11  ;;  %v719_v44 = vrot.slane %v3376_v20, %v4007_v11  ;;  %v720_v45 = vcombine.low %v510_v17, %v517_v18  ;;  %v1098_v46 = vrot.slane %v873_v21, %v4007_v11 }
 0x1ce   :  { %v4137_v47 = vrot.slane %v686_v23, %v4016_v22  ;;  %v3377_v57 = vcombine.high %v510_v17, %v517_v18  ;;  %v1048_v50 = vrot.slane %v1040_v25, %v4016_v22  ;;  %v1055_v51 = vrot.slane %v1041_v26, %v4016_v22 }
 0x1cf   :  { %v4142_v60 = vrot.slane %v694_v30, %v4016_v22  ;;  %v1064_v61 = vrot.slane %v1056_v31, %v4016_v22  ;;  %v1071_v34 = vrot.slane %v1057_v35, %v4016_v22  ;;  %v1105_v55 = vrot.slane %v1091_v43, %v4007_v11 }
 0x1d0   :  { %v552_v0 = vcombine.low %v4043_v49, %v544_v41  ;;  %v553_v2 = vcombine.high %v4043_v49, %v544_v41  ;;  %v568_v7 = vcombine.low %v4046_v52, %v551_v42  ;;  %v569_v8 = vcombine.high %v4046_v52, %v551_v42 }
 0x1d1   :  { %v4152_v6 = vrot.slane %v720_v45, %v4007_v11  ;;  %v736_v9 = vcombine.low %v711_v53, %v719_v44  ;;  %v1106_v58 = vcombine.low %v4062_v54, %v1098_v46  ;;  %v1107_v10 = vcombine.high %v4062_v54, %v1098_v46 }
 0x1d2   :  { %v735_v16 = vrot.slane %v3377_v57, %v4007_v11  ;;  %v1242_v17 = vcombine.low %v1048_v50, %v1055_v51  ;;  %v1122_v18 = vcombine.low %v4079_v24, %v1105_v55  ;;  %v1123_v49 = vcombine.high %v4079_v24, %v1105_v55 }
 0x1d3   :  { %v3386_v19 = vcombine.high %v1048_v50, %v1055_v51  ;;  %v1258_v20 = vcombine.low %v1064_v61, %v1071_v34  ;;  %v3387_v21 = vcombine.high %v1064_v61, %v1071_v34  ;;  %v603_v52 = vcombine.high %v385_v4, %v3838_v36 }
 0x1d4   :  { %v560_v23 = vrot.slane %v552_v0, %v4016_v22  ;;  %v567_v25 = vrot.slane %v553_v2, %v4016_v22  ;;  %v576_v26 = vrot.slane %v568_v7, %v4016_v22  ;;  %v583_v54 = vrot.slane %v569_v8, %v4016_v22 }
 0x1d5   :  { %v4166_v27 = vcombine.low %v4137_v47, %v4142_v60  ;;  %v4169_v30 = vrot.slane %v736_v9, %v4016_v22  ;;  %v1114_v24 = vrot.slane %v1106_v58, %v4016_v22  ;;  %v1121_v31 = vrot.slane %v1107_v10, %v4016_v22 }
 0x1d6   :  { %v744_v35 = vcombine.low %v4152_v6, %v735_v16  ;;  %v1249_v41 = vrot.slane %v1242_v17, %v4007_v11  ;;  %v1130_v42 = vrot.slane %v1122_v18, %v4016_v22  ;;  %v1137_v43 = vrot.slane %v1123_v49, %v4016_v22 }
 0x1d7   :  { %v1257_v53 = vrot.slane %v3386_v19, %v4007_v11  ;;  %v1265_v44 = vrot.slane %v1258_v20, %v4007_v11  ;;  %v1273_v45 = vrot.slane %v3387_v21, %v4007_v11  ;;  %v617_v46 = vrot.slane %v603_v52, %v4007_v11 }
 0x1d8   :  { %v754_v57 = vcombine.low %v560_v23, %v567_v25  ;;  %v3378_v50 = vcombine.high %v560_v23, %v567_v25  ;;  %v770_v51 = vcombine.low %v576_v26, %v583_v54  ;;  %v3379_v61 = vcombine.high %v576_v26, %v583_v54 }
 0x1d9   :  { %v1292_v34 = vcombine.low %v1114_v24, %v1121_v31  ;;  %v1174_v55 = vcombine.low %v4084_v29, %v4093_v48  ;;  %v1182_v0 = vcombine.low %v4100_v59, %v4109_v12  ;;  %v1224_v2 = vcombine.low %v4112_v39, %v4115_v15 }
 0x1da   :  { %v3388_v7 = vcombine.high %v1114_v24, %v1121_v31  ;;  %v1308_v8 = vcombine.low %v1130_v42, %v1137_v43  ;;  %v610_v6 = vrot.slane %v385_v4, %v4007_v11  ;;  %v1232_v9 = vcombine.low %v4123_v28, %v4128_v40 }
 0x1db   :  { %v634_v58 = vcombine.low %v4066_v62, %v617_v46  ;;  %v635_v10 = vcombine.high %v4066_v62, %v617_v46  ;;  %v1181_v16 = vrot.slane %v1174_v55, %v4016_v22  ;;  %v1189_v29 = vrot.slane %v1182_v0, %v4016_v22 }
 0x1dc   :  { %v761_v48 = vrot.slane %v754_v57, %v4007_v11  ;;  %v3389_v59 = vcombine.high %v1130_v42, %v1137_v43  ;;  %v1231_v12 = vrot.slane %v1224_v2, %v4016_v22  ;;  %v1239_v39 = vrot.slane %v1232_v9, %v4016_v22 }
 0x1dd   :  { %v777_v15 = vrot.slane %v770_v51, %v4007_v11  ;;  %v785_v4 = vrot.slane %v3379_v61, %v4007_v11  ;;  %v1299_v28 = vrot.slane %v1292_v34, %v4007_v11  ;;  %v1190_v40 = vcombine.low %v1181_v16, %v1189_v29 }
 0x1de   :  { %v1307_v62 = vrot.slane %v3388_v7, %v4007_v11  ;;  %v618_v17 = vcombine.low %v4053_v56, %v610_v6  ;;  %v619_v18 = vcombine.high %v4053_v56, %v610_v6  ;;  %v1240_v49 = vcombine.low %v1231_v12, %v1239_v39 }
 0x1df   :  { %v1315_v19 = vrot.slane %v1308_v8, %v4007_v11  ;;  %v642_v20 = vrot.slane %v634_v58, %v4016_v22  ;;  %v649_v21 = vrot.slane %v635_v10, %v4016_v22  ;;  %v1342_v52 = vpack.c.bf16 %v1190_v40, %v1190_v40 }
 0x1e0   :  { %v1323_v23 = vrot.slane %v3389_v59, %v4007_v11  ;;  %v1344_v25 = vpack.c.bf16 %v1240_v49, %v1240_v49  ;;  %v4208_v26 = vrot.slane %v744_v35, %v4016_v22  ;;  %v1274_v54 = vcombine.low %v1249_v41, %v1257_v53 }
 0x1e1   :  { %v769_v24 = vrot.slane %v3378_v50, %v4007_v11  ;;  %v1849_v31 = vsel %vm1844_vm1, %v1342_v52, 0  ;;  %v1191_v56 = vcombine.high %v1181_v16, %v1189_v29  ;;  %v1282_v42 = vcombine.low %v1265_v44, %v1273_v45 }
 0x1e2   :  { %v794_v43 = vcombine.low %v777_v15, %v785_v4  ;;  %v626_v46 = vrot.slane %v618_v17, %v4016_v22  ;;  %v633_v57 = vrot.slane %v619_v18, %v4016_v22  ;;  %3506 = vmatpush3.bf16.xpose.msra.mxu0 %v1849_v31  ;;  %v1941_v51 = vsel %vm1844_vm1, %v1344_v25, 0 }
 0x1e3   :  { %v820_v61 = vcombine.low %v642_v20, %v649_v21  ;;  %3518 = vmatpush3.bf16.xpose.msra.mxu1 %v1941_v51  ;;  %3511 = vmatprep.subr.bf16.mxu0 %v3838_v36  ;;  %v1281_v35 = vrot.slane %v1274_v54, %v4016_v22  ;;  %v1289_v41 = vrot.slane %v1282_v42, %v4016_v22 }
 0x1e4   :  { %v3381_v53 = vcombine.high %v642_v20, %v649_v21  ;;  %v752_v44 = vcombine.low %v4169_v30, %v4208_v26  ;;  %3529 = vmatprep.subr.bf16.mxu1 %v3838_v36  ;;  %v1324_v45 = vcombine.low %v1299_v28, %v1307_v62  ;;  %v1332_v50 = vcombine.low %v1315_v19, %v1323_v23 }
 0x1e5   :  { %v786_v34 = vcombine.low %v761_v48, %v769_v24  ;;  %v1343_v55 = vpack.c.bf16 %v1191_v56, %v1191_v56  ;;  %v1290_v0 = vcombine.low %v1281_v35, %v1289_v41  ;;  %v804_v2 = vcombine.low %v626_v46, %v633_v57 }
 0x1e6   :  { %v3380_v7 = vcombine.high %v626_v46, %v633_v57  ;;  %v1339_v8 = vrot.slane %v1332_v50, %v4016_v22  ;;  %v854_v6 = vpack.c.bf16 %v4166_v27, %v4166_v27  ;;  %v827_v9 = vrot.slane %v820_v61, %v4007_v11 }
 0x1e7   :  { %v1346_v58 = vpack.c.bf16 %v1290_v0, %v1290_v0  ;;  %v835_v10 = vrot.slane %v3381_v53, %v4007_v11  ;;  %v856_v16 = vpack.c.bf16 %v752_v44, %v752_v44  ;;  %v801_v29 = vrot.slane %v794_v43, %v4016_v22 }
 0x1e8   :  { %v1331_v59 = vrot.slane %v1324_v45, %v4016_v22  ;;  %v793_v48 = vrot.slane %v786_v34, %v4016_v22  ;;  %v1895_v15 = vsel %vm1844_vm1, %v1343_v55, 0  ;;  %v1241_v4 = vcombine.high %v1231_v12, %v1239_v39 }
 0x1e9   :  { %3508 = vmatmul.mubr.msk.bf16.vlgmr.msra.gmra.mrb[8].mxu0 %vm1844_vm1, %v854_v6  ;;  %v811_v28 = vrot.slane %v804_v2, %v4007_v11  ;;  %v819_v27 = vrot.slane %v3380_v7, %v4007_v11  ;;  %v2033_v40 = vsel %vm1844_vm1, %v1346_v58, 0  ;;  %v703_v17 = vcombine.high %v4137_v47, %v4142_v60 }
 0x1ea   :  { %3512 = vmatpush3.bf16.xpose.msra.mxu0 %v1895_v15  ;;  %3520 = vmatmul.mubr.msk.bf16.vlgmr.msra.gmra.mrb[4].mxu1 %vm1844_vm1, %v856_v16  ;;  %v1340_v62 = vcombine.low %v1331_v59, %v1339_v8  ;;  %v844_v18 = vcombine.low %v827_v9, %v835_v10  ;;  %v802_v12 = vcombine.low %v793_v48, %v801_v29 }
 0x1eb   :  { %3530 = vmatpush3.bf16.xpose.msra.mxu1 %v2033_v40  ;;  %3513 = vmatprep.mubr.msk.bf16.mxu0 %vm3839_vm0, %v3838_v36  ;;  %v1345_v39 = vpack.c.bf16 %v1241_v4, %v1241_v4  ;;  %v836_v49 = vcombine.low %v811_v28, %v819_v27  ;;  %v855_v20 = vpack.c.bf16 %v703_v17, %v703_v17 }
 0x1ec   :  { %3523 = vmatprep.subr.bf16.mxu0 %v3838_v36  ;;  %3531 = vmatprep.mubr.msk.bf16.mxu1 %vm3839_vm0, %v3838_v36  ;;  %v1348_v19 = vpack.c.bf16 %v1340_v62, %v1340_v62  ;;  %v858_v21 = vpack.c.bf16 %v802_v12, %v802_v12  ;;  %v851_v52 = vrot.slane %v844_v18, %v4016_v22 }
 0x1ed   :  { %3541 = vmatprep.subr.bf16.mxu1 %v3838_v36  ;;  %v1987_v47 = vsel %vm1844_vm1, %v1345_v39, 0  ;;  %v1291_v60 = vcombine.high %v1281_v35, %v1289_v41  ;;  %v843_v23 = vrot.slane %v836_v49, %v4016_v22  ;;  %v753_v54 = vcombine.high %v4169_v30, %v4208_v26  ;;  %v1355_v41 = vpop.permute.xlu0 %1354 }
 0x1ee   :  { %v2125_v25 = vsel %vm1844_vm1, %v1348_v19, 0  ;;  %v1341_v46 = vcombine.high %v1331_v59, %v1339_v8  ;;  %v803_v30 = vcombine.high %v793_v48, %v801_v29  ;;  %v1366_v53 = vcombine.high %v3996_v1, %v3838_v36 }
 0x1ef   :  { %v852_v24 = vcombine.low %v843_v23, %v851_v52  ;;  %v1347_v31 = vpack.c.bf16 %v1291_v60, %v1291_v60  ;;  %v857_v56 = vpack.c.bf16 %v753_v54, %v753_v54  ;;  %v853_v61 = vcombine.high %v843_v23, %v851_v52 }
 0x1f0   :  { %v1349_v26 = vpack.c.bf16 %v1341_v46, %v1341_v46  ;;  %v859_v57 = vpack.c.bf16 %v803_v30, %v803_v30  ;;  %v1381_v44 = vcombine.high %v1355_v41, %v3838_v36  ;;  %v1373_v45 = vrot.slane %v3996_v1, %v4007_v11 }
 0x1f1   :  { %3514 = vmatmul.mubr.msk.bf16.vlgmr.msra.gmra.mrb[12].mxu0 %vm1844_vm1, %v855_v20  ;;  %v860_v42 = vpack.c.bf16 %v852_v24, %v852_v24  ;;  %v2079_v43 = vsel %vm1844_vm1, %v1347_v31, 0  ;;  %v861_v35 = vpack.c.bf16 %v853_v61, %v853_v61  ;;  %v1380_v50 = vrot.slane %v1366_v53, %v4007_v11 }
 0x1f2   :  { %3524 = vmatpush3.bf16.xpose.msra.mxu0 %v1987_v47  ;;  %3532 = vmatmul.mubr.msk.bf16.vlgmr.msra.gmra.mrb[8].mxu1 %vm1844_vm1, %v858_v21  ;;  %v2171_v51 = vsel %vm1844_vm1, %v1349_v26, 0  ;;  %v1388_v34 = vrot.slane %v1355_v41, %v4007_v11  ;;  %v1395_v55 = vrot.slane %v1381_v44, %v4007_v11  ;;  %v1841_v21 = vand.u32 127, %v129_v37 }
 0x1f3   :  { %3542 = vmatpush3.bf16.xpose.msra.mxu1 %v2125_v25  ;;  %3525 = vmatprep.mubr.msk.bf16.mxu0 %vm3839_vm0, %v3838_v36 }
 0x1f4   :  { %3535 = vmatprep.subr.bf16.mxu0 %v3838_v36  ;;  %3543 = vmatprep.mubr.msk.bf16.mxu1 %vm3839_vm0, %v3838_v36  ;;  %v1396_v0 = vcombine.low %v1373_v45, %v1388_v34  ;;  %v1397_v2 = vcombine.high %v1373_v45, %v1388_v34  ;;  %v1412_v7 = vcombine.low %v1380_v50, %v1395_v55 }
 0x1f5   :  { %3553 = vmatprep.subr.bf16.mxu1 %v3838_v36  ;;  %v1413_v8 = vcombine.high %v1380_v50, %v1395_v55  ;;  %vm1842_vm3 = vcmp.gt.s32.totalorder %v1841_v21, %v3965_v38 }
 0x1f6   :  { %v1404_v6 = vrot.slane %v1396_v0, %v4016_v22  ;;  %v1411_v9 = vrot.slane %v1397_v2, %v4016_v22  ;;  %v1420_v58 = vrot.slane %v1412_v7, %v4016_v22  ;;  %v1843_v52 = vsel %vm1842_vm3, -1e+09, %v3838_v36 }
 0x1f7   :  { %v1427_v10 = vrot.slane %v1413_v8, %v4016_v22 }
 0x1f8   :  { %v1630_v16 = vcombine.low %v1404_v6, %v1411_v9  ;;  %v3390_v1 = vcombine.high %v1404_v6, %v1411_v9 }
 0x1f9   :  { %3526 = vmatmul.mubr.msk.bf16.vlgmr.msra.gmra.mrb[16].mxu0 %vm1844_vm1, %v857_v56  ;;  %v1646_v29 = vcombine.low %v1420_v58, %v1427_v10  ;;  %v3391_v59 = vcombine.high %v1420_v58, %v1427_v10 }
 0x1fa   :  { %3536 = vmatpush3.bf16.xpose.msra.mxu0 %v2079_v43  ;;  %3544 = vmatmul.mubr.msk.bf16.vlgmr.msra.gmra.mrb[12].mxu1 %vm1844_vm1, %v860_v42  ;;  %v1637_v48 = vrot.slane %v1630_v16, %v4007_v11  ;;  %v1645_v15 = vrot.slane %v3390_v1, %v4007_v11 }
 0x1fb   :  { %3537 = vmatprep.mubr.msk.bf16.mxu0 %vm3839_vm0, %v3838_v36  ;;  %3547 = vmatprep.subr.bf16.mxu0 %v3838_v36  ;;  %v1653_v4 = vrot.slane %v1646_v29, %v4007_v11  ;;  %v1661_v28 = vrot.slane %v3391_v59, %v4007_v11 }
 0x1fc   :  { %3555 = vmatprep.mubr.msk.bf16.mxu1 %vm3839_vm0, %v3838_v36  ;;  %v1662_v27 = vcombine.low %v1637_v48, %v1645_v15 }
 0x1fd   :  { %v1670_v40 = vcombine.low %v1653_v4, %v1661_v28 }
 0x1fe   :  { %v1669_v62 = vrot.slane %v1662_v27, %v4016_v22 }
 0x1ff   :  { %v1677_v17 = vrot.slane %v1670_v40, %v4016_v22 }
 0x201   :  { %3538 = vmatmul.mubr.msk.bf16.vlgmr.msra.gmra.mrb[20].mxu0 %vm1844_vm1, %v859_v57  ;;  %v1678_v18 = vcombine.low %v1669_v62, %v1677_v17  ;;  %v1679_v12 = vcombine.high %v1669_v62, %v1677_v17 }
 0x202   :  { %3548 = vmatpush3.bf16.xpose.msra.mxu0 %v2171_v51  ;;  %3549 = vmatprep.mubr.msk.bf16.mxu0 %vm3839_vm0, %v3838_v36 }
 0x203   :  { %3559 = vmatprep.subr.bf16.mxu0 %v3838_v36  ;;  %v1830_v39 = vpack.c.bf16 %v1678_v18, %v1678_v18  ;;  %v1831_v49 = vpack.c.bf16 %v1679_v12, %v1679_v12 }
 0x205   :  { %v2307_v19 = vsel %vm2305_vm2, %v1830_v39, 0  ;;  %v2353_v20 = vsel %vm2305_vm2, %v1831_v49, 0  ;;  %v1357_v39 = vpop.permute.xlu1 %1356  ;;  %v1432_v49 = vcombine.high %v4000_v5, %v3838_v36 }
 0x206   :  { %3554 = vmatpush3.bf16.msra.mxu1 %v2307_v19  ;;  %v1447_v19 = vcombine.high %v1357_v39, %v3838_v36 }
 0x207   :  { %3565 = vmatprep.subr.bf16.mxu1 %v3838_v36  ;;  %v1446_v21 = vrot.slane %v1432_v49, %v4007_v11 }
 0x209   :  { %3550 = vmatmul.mubr.msk.bf16.vlgmr.msra.gmra.mrb[24].mxu0 %vm1844_vm1, %v861_v35 }
 0x20a   :  { %3561 = vmatprep.mubr.msk.bf16.mxu0 %vm3839_vm0, %v3838_v36  ;;  %3560 = vmatpush3.bf16.msra.mxu0 %v2353_v20  ;;  %v1439_v20 = vrot.slane %v4000_v5, %v4007_v11 }
 0x20b   :  { %3571 = vmatprep.subr.bf16.mxu0 %v3838_v36 }
 0x2bc   :  { %v1885_v47 = vpop.f32.mrb[8].mxu0 }
 0x2bd   :  { %v4298_v60 = vadd.f32 %v1885_v47, %v1843_v52  ;;  %v3509_v23 = vpop.f32.mrb[9].mxu0  ;;  %v1977_v25 = vpop.f32.mrb[4].mxu1  ;;  %v1461_v47 = vrot.slane %v1447_v19, %v4007_v11 }
 0x2be   :  { %v1888_v54 = vpop.f32.mrb[10].mxu0  ;;  %v4300_v24 = vadd.f32 %v1977_v25, %v1843_v52  ;;  %v3521_v31 = vpop.f32.mrb[5].mxu1 }
 0x2bf   :  { %v3510_v56 = vpop.f32.mrb[11].mxu0  ;;  %v1980_v42 = vpop.f32.mrb[6].mxu1  ;;  %v2214_v43 = vsel %vm2213_vm4, %v4298_v60, -inf  ;;  %v1478_v54 = vcombine.low %v1446_v21, %v1461_v47  ;;  %v1479_v31 = vcombine.high %v1446_v21, %v1461_v47 }
 0x2c0   :  { %2215 = vmax.xlane.f32.xlu0 %v2214_v43  ;;  %v3522_v37 = vpop.f32.mrb[7].mxu1  ;;  %v2220_v38 = vsel %vm2213_vm4, %v4300_v24, -inf }
 0x2c1   :  { %2221 = vmax.xlane.f32.xlu1 %v2220_v38  ;;  %v1486_v43 = vrot.slane %v1478_v54, %v4016_v22  ;;  %v1493_v37 = vrot.slane %v1479_v31, %v4016_v22 }
 0x2c4   :  { %v1931_v46 = vpop.f32.mrb[12].mxu0 }
 0x2c5   :  { %v4306_v30 = vadd.f32 %v1931_v46, %v1843_v52  ;;  %v3515_v26 = vpop.f32.mrb[13].mxu0  ;;  %v2069_v57 = vpop.f32.mrb[8].mxu1  ;;  %v1696_v46 = vcombine.low %v1486_v43, %v1493_v37 }
 0x2c6   :  { %v1934_v51 = vpop.f32.mrb[14].mxu0  ;;  %v4308_v61 = vadd.f32 %v2069_v57, %v1843_v52  ;;  %v3533_v35 = vpop.f32.mrb[9].mxu1  ;;  %v3393_v26 = vcombine.high %v1486_v43, %v1493_v37 }
 0x2c7   :  { %v3516_v41 = vpop.f32.mrb[15].mxu0  ;;  %v2072_v53 = vpop.f32.mrb[10].mxu1  ;;  %v2217_v44 = vsel %vm2213_vm4, %v4306_v30, -inf  ;;  %v1703_v35 = vrot.slane %v1696_v46, %v4007_v11 }
 0x2c8   :  { %2218 = vmax.xlane.f32.xlu1 %v2217_v44  ;;  %v3534_v45 = vpop.f32.mrb[11].mxu1  ;;  %v2226_v50 = vsel %vm2213_vm4, %v4308_v61, -inf  ;;  %v1711_v41 = vrot.slane %v3393_v26, %v4007_v11 }
 0x2c9   :  { %2227 = vmax.xlane.f32.xlu0 %v2226_v50 }
 0x2cc   :  { %v2023_v34 = vpop.f32.mrb[16].mxu0 }
 0x2cd   :  { %v4314_v55 = vadd.f32 %v2023_v34, %v1843_v52  ;;  %v3527_v0 = vpop.f32.mrb[17].mxu0  ;;  %v2161_v2 = vpop.f32.mrb[12].mxu1 }
 0x2ce   :  { %v2026_v7 = vpop.f32.mrb[18].mxu0  ;;  %v3545_v8 = vpop.f32.mrb[13].mxu1  ;;  %v4316_v6 = vadd.f32 %v2161_v2, %v1843_v52  ;;  %v1720_v2 = vcombine.low %v1703_v35, %v1711_v41 }
 0x2cf   :  { %v3528_v9 = vpop.f32.mrb[19].mxu0  ;;  %v2164_v58 = vpop.f32.mrb[14].mxu1  ;;  %v2223_v10 = vsel %vm2213_vm4, %v4314_v55, -inf }
 0x2d0   :  { %2224 = vmax.xlane.f32.xlu1 %v2223_v10  ;;  %v3546_v16 = vpop.f32.mrb[15].mxu1  ;;  %v2232_v1 = vsel %vm2213_vm4, %v4316_v6, -inf  ;;  %v1727_v9 = vrot.slane %v1720_v2, %v4016_v22 }
 0x2d4   :  { %2233 = vmax.xlane.f32.xlu1 %v2232_v1  ;;  %v2115_v29 = vpop.f32.mrb[20].mxu0 }
 0x2d5   :  { %v4322_v59 = vadd.f32 %v2115_v29, %v1843_v52  ;;  %v3539_v48 = vpop.f32.mrb[21].mxu0 }
 0x2d6   :  { %v2118_v15 = vpop.f32.mrb[22].mxu0 }
 0x2d7   :  { %v3540_v4 = vpop.f32.mrb[23].mxu0  ;;  %v2229_v28 = vsel %vm2213_vm4, %v4322_v59, -inf }
 0x2d8   :  { %2230 = vmax.xlane.f32.xlu1 %v2229_v28  ;;  %v1505_v4 = vrot.slane %v3994_v63, %v4007_v11 }
 0x2dc   :  { %v2207_v27 = vpop.f32.mrb[24].mxu0 }
 0x2dd   :  { %v4326_v40 = vadd.f32 %v2207_v27, %v1843_v52  ;;  %v3551_v62 = vpop.f32.mrb[25].mxu0  ;;  %v1454_v52 = vrot.slane %v1357_v39, %v4007_v11 }
 0x2de   :  { %v2210_v17 = vpop.f32.mrb[26].mxu0 }
 0x2df   :  { %v3552_v18 = vpop.f32.mrb[27].mxu0  ;;  %1358 = vrot.lane.b32.xlu0 %v3994_v63, %s3835_s2  ;;  %v2235_v12 = vsel %vm2213_vm4, %v4326_v40, -inf  ;;  %v1462_v23 = vcombine.low %v1439_v20, %v1454_v52  ;;  %v1463_v25 = vcombine.high %v1439_v20, %v1454_v52 }
 0x2e0   :  { %2236 = vmax.xlane.f32.xlu1 %v2235_v12 }
 0x2e1   :  { %v1470_v56 = vrot.slane %v1462_v23, %v4016_v22  ;;  %v1477_v42 = vrot.slane %v1463_v25, %v4016_v22 }
 0x2e3   :  { %v1680_v38 = vcombine.low %v1470_v56, %v1477_v42  ;;  %v3392_v5 = vcombine.high %v1470_v56, %v1477_v42 }
 0x2e5   :  { %v1687_v57 = vrot.slane %v1680_v38, %v4007_v11  ;;  %v1695_v51 = vrot.slane %v3392_v5, %v4007_v11 }
 0x2e7   :  { %v1712_v0 = vcombine.low %v1687_v57, %v1695_v51 }
 0x2e9   :  { %v1719_v8 = vrot.slane %v1712_v0, %v4016_v22 }
 0x2eb   :  { %v1728_v29 = vcombine.low %v1719_v8, %v1727_v9  ;;  %v1729_v21 = vcombine.high %v1719_v8, %v1727_v9 }
 0x2ed   :  { %v1833_v46 = vpack.c.bf16 %v1729_v21, %v1729_v21 }
 0x2f1   :  { %1360 = vrot.lane.b32.xlu1 %v3998_v3, %s3835_s2 }
 0x34d   :  { %v2216_v53 = vpop.xlane.xlu0 %2215 }
 0x34e   :  { %v2238_v44 = vsub.f32 %v4298_v60, %v2216_v53  ;;  %v2222_v45 = vpop.xlane.xlu1 %2221  ;;  %v1498_v60 = vcombine.high %v3994_v63, %v3838_v36 }
 0x34f   :  { %v2240_v50 = vsub.f32 %v4300_v24, %v2222_v45 }
 0x350   :  { %v2246_v34 = vmul.f32 1.442695, %v2238_v44  ;;  %v1512_v62 = vrot.slane %v1498_v60, %v4007_v11 }
 0x351   :  { %v2250_v7 = vmul.f32 1.442695, %v2240_v50 }
 0x352   :  { %3677 = vpow2.f32 %v2246_v34 }
 0x353   :  { %3679 = vpow2.f32 %v2250_v7 }
 0x355   :  { %v2219_v58 = vpop.xlane.xlu1 %2218 }
 0x356   :  { %v2239_v10 = vsub.f32 %v4306_v30, %v2219_v58  ;;  %v2228_v16 = vpop.xlane.xlu0 %2227  ;;  %v2445_v58 = vsel %vm2305_vm2, %v1833_v46, 0 }
 0x357   :  { %v2242_v1 = vsub.f32 %v4308_v61, %v2228_v16  ;;  %v1832_v61 = vpack.c.bf16 %v1728_v29, %v1728_v29 }
 0x358   :  { %v2248_v24 = vmul.f32 1.442695, %v2239_v10 }
 0x359   :  { %v2254_v48 = vmul.f32 1.442695, %v2242_v1  ;;  %v2399_v31 = vsel %vm2305_vm2, %v1832_v61, 0 }
 0x35a   :  { %3681 = vpow2.f32 %v2248_v24  ;;  %v1359_v15 = vpop.permute.xlu0 %1358 }
 0x35b   :  { %3683 = vpow2.f32 %v2254_v48  ;;  %v1513_v28 = vcombine.high %v1359_v15, %v3838_v36  ;;  %v1520_v27 = vrot.slane %v1359_v15, %v4007_v11 }
 0x35c   :  { %v3678_v30 = vpop.eup %3677 }
 0x35d   :  { %v3680_v17 = vpop.eup %3679  ;;  %v1527_v18 = vrot.slane %v1513_v28, %v4007_v11  ;;  %v1528_v12 = vcombine.low %v1505_v4, %v1520_v27  ;;  %v1529_v39 = vcombine.high %v1505_v4, %v1520_v27  ;;  %v2225_v49 = vpop.xlane.xlu1 %2224  ;;  %v2262_v19 = vsel %vm2213_vm4, %v3678_v30, 0.0 }
 0x35e   :  { %v2241_v20 = vsub.f32 %v4314_v55, %v2225_v49  ;;  %2263 = vadd.xlane.f32.xlu0 %v2262_v19  ;;  %v2294_v63 = vpack.c.bf16 %v3678_v30, %v3678_v30  ;;  %v2268_v56 = vsel %vm2213_vm4, %v3680_v17, 0.0  ;;  %v2296_v44 = vpack.c.bf16 %v3680_v17, %v3680_v17 }
 0x35f   :  { %v1536_v52 = vrot.slane %v1528_v12, %v4016_v22  ;;  %v1543_v47 = vrot.slane %v1529_v39, %v4016_v22  ;;  %v1544_v23 = vcombine.low %v1512_v62, %v1527_v18  ;;  %v1545_v25 = vcombine.high %v1512_v62, %v1527_v18 }
 0x360   :  { %v2252_v54 = vmul.f32 1.442695, %v2241_v20  ;;  %3556 = vmatmul.mubr.msk.bf16.vlgmr.msra.gmra.mrb[16].mxu1 %vm2213_vm4, %v2294_v63  ;;  %v1564_v18 = vcombine.high %v3998_v3, %v3838_v36 }
 0x361   :  { %v1552_v42 = vrot.slane %v1544_v23, %v4016_v22  ;;  %v1559_v55 = vrot.slane %v1545_v25, %v4016_v22  ;;  %v1730_v43 = vcombine.low %v1536_v52, %v1543_v47  ;;  %v3394_v37 = vcombine.high %v1536_v52, %v1543_v47  ;;  %3566 = vmatpush3.bf16.msra.mxu1 %v2399_v31  ;;  %v2234_v38 = vpop.xlane.xlu1 %2233 }
 0x362   :  { %3685 = vpow2.f32 %v2252_v54  ;;  %v2244_v5 = vsub.f32 %v4316_v6, %v2234_v38  ;;  %2269 = vadd.xlane.f32.xlu0 %v2268_v56  ;;  %3567 = vmatprep.mubr.msk.bf16.mxu1 %vm3839_vm0, %v3838_v36  ;;  %v1578_v52 = vrot.slane %v1564_v18, %v4007_v11 }
 0x363   :  { %v1737_v26 = vrot.slane %v1730_v43, %v4007_v11  ;;  %v1745_v57 = vrot.slane %v3394_v37, %v4007_v11  ;;  %v1746_v51 = vcombine.low %v1552_v42, %v1559_v55  ;;  %v3395_v35 = vcombine.high %v1552_v42, %v1559_v55  ;;  %3577 = vmatprep.subr.bf16.mxu1 %v3838_v36 }
 0x364   :  { %v3682_v41 = vpop.eup %3681  ;;  %v2258_v53 = vmul.f32 1.442695, %v2244_v5 }
 0x365   :  { %v3684_v45 = vpop.eup %3683  ;;  %v1753_v50 = vrot.slane %v1746_v51, %v4007_v11  ;;  %v1761_v6 = vrot.slane %v3395_v35, %v4007_v11  ;;  %v2231_v34 = vpop.xlane.xlu1 %2230  ;;  %v2265_v0 = vsel %vm2213_vm4, %v3682_v41, 0.0  ;;  %v2295_v2 = vpack.c.bf16 %v3682_v41, %v3682_v41 }
 0x366   :  { %3687 = vpow2.f32 %v2258_v53  ;;  %v2243_v7 = vsub.f32 %v4322_v59, %v2231_v34  ;;  %2266 = vadd.xlane.f32.xlu1 %v2265_v0  ;;  %v2274_v8 = vsel %vm2213_vm4, %v3684_v45, 0.0  ;;  %v1762_v9 = vcombine.low %v1737_v26, %v1745_v57 }
 0x367   :  { %3562 = vmatmul.mubr.msk.bf16.vlgmr.msra.gmra.mrb[28].mxu0 %vm2213_vm4, %v2295_v2  ;;  %2275 = vadd.xlane.f32.xlu0 %v2274_v8  ;;  %v1770_v10 = vcombine.low %v1753_v50, %v1761_v6  ;;  %v2298_v19 = vpack.c.bf16 %v3684_v45, %v3684_v45 }
 0x368   :  { %v2256_v16 = vmul.f32 1.442695, %v2243_v7  ;;  %3568 = vmatmul.mubr.msk.bf16.vlgmr.msra.gmra.mrb[20].mxu1 %vm2213_vm4, %v2296_v44  ;;  %3572 = vmatpush3.bf16.msra.mxu0 %v2445_v58  ;;  %v1769_v59 = vrot.slane %v1762_v9, %v4016_v22 }
 0x369   :  { %3573 = vmatprep.mubr.msk.bf16.mxu0 %vm3839_vm0, %v3838_v36  ;;  %3583 = vmatprep.subr.bf16.mxu0 %v3838_v36  ;;  %v1777_v1 = vrot.slane %v1770_v10, %v4016_v22 }
 0x36a   :  { %3689 = vpow2.f32 %v2256_v16  ;;  %3579 = vmatprep.mubr.msk.bf16.mxu1 %vm3839_vm0, %v3838_v36 }
 0x36b   :  { %v1778_v60 = vcombine.low %v1769_v59, %v1777_v1  ;;  %v1779_v24 = vcombine.high %v1769_v59, %v1777_v1 }
 0x36c   :  { %v3686_v29 = vpop.eup %3685 }
 0x36d   :  { %v2237_v48 = vpop.xlane.xlu1 %2236  ;;  %v2271_v15 = vsel %vm2213_vm4, %v3686_v29, 0.0  ;;  %v2297_v4 = vpack.c.bf16 %v3686_v29, %v3686_v29  ;;  %v1834_v28 = vpack.c.bf16 %v1778_v60, %v1778_v60  ;;  %v1835_v27 = vpack.c.bf16 %v1779_v24, %v1779_v24 }
 0x36e   :  { %v2245_v30 = vsub.f32 %v4326_v40, %v2237_v48  ;;  %2272 = vadd.xlane.f32.xlu0 %v2271_v15  ;;  %v1571_v40 = vrot.slane %v3998_v3, %v4007_v11 }
 0x36f   :  { %3574 = vmatmul.mubr.msk.bf16.vlgmr.msra.gmra.mrb[32].mxu0 %vm2213_vm4, %v2297_v4  ;;  %v2491_v62 = vsel %vm2305_vm2, %v1834_v28, 0  ;;  %v2537_v61 = vsel %vm2305_vm2, %v1835_v27, 0 }
 0x370   :  { %v3688_v17 = vpop.eup %3687  ;;  %v2260_v12 = vmul.f32 1.442695, %v2245_v30  ;;  %3578 = vmatpush3.bf16.msra.mxu1 %v2491_v62  ;;  %3584 = vmatpush3.bf16.msra.mxu0 %v2537_v61 }
 0x371   :  { %v1361_v39 = vpop.permute.xlu1 %1360  ;;  %v2280_v49 = vsel %vm2213_vm4, %v3688_v17, 0.0  ;;  %3585 = vmatprep.mubr.msk.bf16.mxu0 %vm3839_vm0, %v3838_v36  ;;  %3589 = vmatprep.subr.bf16.mxu1 %v3838_v36  ;;  %v2300_v10 = vpack.c.bf16 %v3688_v17, %v3688_v17 }
 0x372   :  { %3691 = vpow2.f32 %v2260_v12  ;;  %v1579_v20 = vcombine.high %v1361_v39, %v3838_v36  ;;  %v1586_v63 = vrot.slane %v1361_v39, %v4007_v11  ;;  %2281 = vadd.xlane.f32.xlu0 %v2280_v49  ;;  %3595 = vmatprep.subr.bf16.mxu0 %v3838_v36 }
 0x373   :  { %3580 = vmatmul.mubr.msk.bf16.vlgmr.msra.gmra.mrb[24].mxu1 %vm2213_vm4, %v2298_v19 }
 0x374   :  { %v3690_v21 = vpop.eup %3689  ;;  %v1593_v47 = vrot.slane %v1579_v20, %v4007_v11  ;;  %v1594_v23 = vcombine.low %v1571_v40, %v1586_v63  ;;  %v1595_v25 = vcombine.high %v1571_v40, %v1586_v63  ;;  %3591 = vmatprep.mubr.msk.bf16.mxu1 %vm3839_vm0, %v3838_v36 }
 0x375   :  { %v2277_v3 = vsel %vm2213_vm4, %v3690_v21, 0.0  ;;  %v2299_v54 = vpack.c.bf16 %v3690_v21, %v3690_v21 }
 0x376   :  { %v1602_v31 = vrot.slane %v1594_v23, %v4016_v22  ;;  %v1609_v56 = vrot.slane %v1595_v25, %v4016_v22  ;;  %v1610_v42 = vcombine.low %v1578_v52, %v1593_v47  ;;  %v1611_v55 = vcombine.high %v1578_v52, %v1593_v47  ;;  %2278 = vadd.xlane.f32.xlu0 %v2277_v3 }
 0x377   :  { %3586 = vmatmul.mubr.msk.bf16.vlgmr.msra.gmra.mrb[36].mxu0 %vm2213_vm4, %v2299_v54 }
 0x378   :  { %v1618_v43 = vrot.slane %v1610_v42, %v4016_v22  ;;  %v1625_v37 = vrot.slane %v1611_v55, %v4016_v22  ;;  %v1780_v38 = vcombine.low %v1602_v31, %v1609_v56  ;;  %v3396_v5 = vcombine.high %v1602_v31, %v1609_v56  ;;  %3597 = vmatprep.mubr.msk.bf16.mxu0 %vm3839_vm0, %v3838_v36 }
 0x37a   :  { %v1787_v46 = vrot.slane %v1780_v38, %v4007_v11  ;;  %v1795_v26 = vrot.slane %v3396_v5, %v4007_v11  ;;  %v1796_v57 = vcombine.low %v1618_v43, %v1625_v37  ;;  %v3397_v51 = vcombine.high %v1618_v43, %v1625_v37 }
 0x37c   :  { %v3692_v35 = vpop.eup %3691  ;;  %v1803_v41 = vrot.slane %v1796_v57, %v4007_v11  ;;  %v1811_v53 = vrot.slane %v3397_v51, %v4007_v11  ;;  %v1812_v44 = vcombine.low %v1787_v46, %v1795_v26 }
 0x37d   :  { %v2283_v45 = vsel %vm2213_vm4, %v3692_v35, 0.0  ;;  %v2301_v16 = vpack.c.bf16 %v3692_v35, %v3692_v35 }
 0x37e   :  { %2284 = vadd.xlane.f32.xlu0 %v2283_v45  ;;  %v1820_v50 = vcombine.low %v1803_v41, %v1811_v53  ;;  %v1819_v6 = vrot.slane %v1812_v44, %v4016_v22 }
 0x380   :  { %v1827_v34 = vrot.slane %v1820_v50, %v4016_v22 }
 0x382   :  { %v1828_v0 = vcombine.low %v1819_v6, %v1827_v34  ;;  %v1829_v2 = vcombine.high %v1819_v6, %v1827_v34 }
 0x384   :  { %v1836_v7 = vpack.c.bf16 %v1828_v0, %v1828_v0  ;;  %v1837_v8 = vpack.c.bf16 %v1829_v2, %v1829_v2 }
 0x386   :  { %v2583_v9 = vsel %vm2305_vm2, %v1836_v7, 0  ;;  %v2629_v58 = vsel %vm2305_vm2, %v1837_v8, 0 }
 0x387   :  { %3590 = vmatpush3.bf16.msra.mxu1 %v2583_v9  ;;  %3596 = vmatpush3.bf16.msra.mxu0 %v2629_v58 }
 0x38a   :  { %3592 = vmatmul.mubr.msk.bf16.vlgmr.msra.gmra.mrb[28].mxu1 %vm2213_vm4, %v2300_v10  ;;  %3598 = vmatmul.mubr.msk.bf16.vlgmr.msra.gmra.mrb[40].mxu0 %vm2213_vm4, %v2301_v16 }
 0x3eb   :  { %v2264_v59 = vpop.xlane.xlu0 %2263 }
 0x3ec   :  { %3693 = vrcp.f32 %v2264_v59 }
 0x3ef   :  { %v2270_v1 = vpop.xlane.xlu0 %2269 }
 0x3f3   :  { %v2267_v24 = vpop.xlane.xlu1 %2266 }
 0x3f4   :  { %v2276_v60 = vpop.xlane.xlu0 %2275  ;;  %3695 = vrcp.f32 %v2267_v24 }
 0x3f5   :  { %3697 = vrcp.f32 %v2270_v1 }
 0x3f6   :  { %v3694_v27 = vpop.eup %3693 }
 0x3fb   :  { %v2273_v29 = vpop.xlane.xlu0 %2272 }
 0x3fc   :  { %3699 = vrcp.f32 %v2273_v29 }
 0x3fd   :  { %3701 = vrcp.f32 %v2276_v60 }
 0x3fe   :  { %v3696_v61 = vpop.eup %3695 }
 0x3ff   :  { %v4434_v15 = vpop.xlane.xlu0 %2281  ;;  %v3698_v3 = vpop.eup %3697 }
 0x403   :  { %v2279_v17 = vpop.xlane.xlu0 %2278 }
 0x404   :  { %3703 = vrcp.f32 %v2279_v17 }
 0x405   :  { %3705 = vrcp.f32 %v4434_v15 }
 0x406   :  { %v3700_v26 = vpop.eup %3699 }
 0x407   :  { %v3702_v8 = vpop.eup %3701 }
 0x433   :  { %v2343_v48 = vpop.f32.mrb[16].mxu1 }
 0x434   :  { %v3557_v4 = vpop.f32.mrb[17].mxu1  ;;  %v2671_v62 = vmul.f32 %v3694_v27, %v2343_v48 }
 0x435   :  { %v2346_v28 = vpop.f32.mrb[18].mxu1 }
 0x436   :  { %v3558_v30 = vpop.f32.mrb[19].mxu1  ;;  %v2679_v12 = vcombine.high %v2671_v62, %v3838_v36  ;;  %v2686_v63 = vrot.slane %v2671_v62, %v4007_v11 }
 0x438   :  { %v2693_v54 = vrot.slane %v2679_v12, %v4007_v11 }
 0x43a   :  { %v2389_v18 = vpop.f32.mrb[28].mxu0 }
 0x43b   :  { %v2672_v39 = vmul.f32 %v3696_v61, %v2389_v18  ;;  %v2435_v49 = vpop.f32.mrb[20].mxu1  ;;  %v3563_v19 = vpop.f32.mrb[29].mxu0 }
 0x43c   :  { %v3569_v40 = vpop.f32.mrb[21].mxu1  ;;  %v2392_v20 = vpop.f32.mrb[30].mxu0  ;;  %v2673_v55 = vmul.f32 %v3698_v3, %v2435_v49 }
 0x43d   :  { %v2694_v21 = vcombine.high %v2672_v39, %v3838_v36  ;;  %v2701_v52 = vrot.slane %v2672_v39, %v4007_v11  ;;  %v2438_v47 = vpop.f32.mrb[22].mxu1  ;;  %v3564_v23 = vpop.f32.mrb[31].mxu0 }
 0x43e   :  { %v3570_v25 = vpop.f32.mrb[23].mxu1  ;;  %v2745_v44 = vcombine.high %v2673_v55, %v3838_v36  ;;  %v2752_v9 = vrot.slane %v2673_v55, %v4007_v11  ;;  %v3704_v18 = vpop.eup %3703 }
 0x43f   :  { %v2708_v31 = vrot.slane %v2694_v21, %v4007_v11  ;;  %v2709_v56 = vcombine.low %v2686_v63, %v2701_v52  ;;  %v2710_v42 = vcombine.high %v2686_v63, %v2701_v52 }
 0x440   :  { %v2759_v48 = vrot.slane %v2745_v44, %v4007_v11 }
 0x441   :  { %v2717_v43 = vrot.slane %v2709_v56, %v4016_v22  ;;  %v2724_v37 = vrot.slane %v2710_v42, %v4016_v22  ;;  %v2725_v38 = vcombine.low %v2693_v54, %v2708_v31  ;;  %v2726_v5 = vcombine.high %v2693_v54, %v2708_v31 }
 0x442   :  { %v2481_v46 = vpop.f32.mrb[32].mxu0 }
 0x443   :  { %v2733_v57 = vrot.slane %v2725_v38, %v4016_v22  ;;  %v2740_v51 = vrot.slane %v2726_v5, %v4016_v22  ;;  %v2943_v35 = vcombine.low %v2717_v43, %v2724_v37  ;;  %v3414_v41 = vcombine.high %v2717_v43, %v2724_v37  ;;  %v3575_v53 = vpop.f32.mrb[33].mxu0 }
 0x444   :  { %v2674_v45 = vmul.f32 %v3700_v26, %v2481_v46  ;;  %v2484_v50 = vpop.f32.mrb[34].mxu0 }
 0x445   :  { %v3576_v6 = vpop.f32.mrb[35].mxu0  ;;  %v2950_v34 = vrot.slane %v2943_v35, %v4007_v11  ;;  %v2958_v0 = vrot.slane %v3414_v41, %v4007_v11  ;;  %v2959_v2 = vcombine.low %v2733_v57, %v2740_v51  ;;  %v3415_v7 = vcombine.high %v2733_v57, %v2740_v51  ;;  %v3669_v57 = vld [vmem:[#allocation8] sm:$0xff]   ;;  %v3670_v51 = vld [vmem:[#allocation8 + $0x8] sm:$0xff]   ;;  %v2285_v35 = vpop.xlane.xlu0 %2284 }
 0x446   :  { %v2760_v58 = vcombine.high %v2674_v45, %v3838_v36  ;;  %v2767_v10 = vrot.slane %v2674_v45, %v4007_v11  ;;  %v2527_v16 = vpop.f32.mrb[24].mxu1  ;;  %3601 = vmatprep.subr.bf16.mxu1 %v3669_v57  ;;  %3707 = vrcp.f32 %v2285_v35 }
 0x447   :  { %v2675_v59 = vmul.f32 %v3702_v8, %v2527_v16  ;;  %v3581_v1 = vpop.f32.mrb[25].mxu1  ;;  %v2966_v60 = vrot.slane %v2959_v2, %v4007_v11  ;;  %v2974_v24 = vrot.slane %v3415_v7, %v4007_v11  ;;  %v2975_v29 = vcombine.low %v2950_v34, %v2958_v0  ;;  %3602 = vmatpush3.bf16.msra.mxu1 %v3669_v57 }
 0x448   :  { %v2774_v4 = vrot.slane %v2760_v58, %v4007_v11  ;;  %v2775_v28 = vcombine.low %v2752_v9, %v2767_v10  ;;  %v2776_v27 = vcombine.high %v2752_v9, %v2767_v10  ;;  %v2530_v30 = vpop.f32.mrb[26].mxu1  ;;  %3603 = vmatprep.subr.bf16.mxu1 %v3670_v51 }
 0x449   :  { %v2811_v62 = vcombine.high %v2675_v59, %v3838_v36  ;;  %v3582_v61 = vpop.f32.mrb[27].mxu1  ;;  %v2983_v17 = vcombine.low %v2966_v60, %v2974_v24  ;;  %v2818_v20 = vrot.slane %v2675_v59, %v4007_v11  ;;  %v4461_v52 = vrot.slane %v2975_v29, %v4016_v22  ;;  %v3672_v30 = vld [vmem:[#allocation8 + $0x18] sm:$0xff]  }
 0x44a   :  { %v2783_v12 = vrot.slane %v2775_v28, %v4016_v22  ;;  %v2790_v39 = vrot.slane %v2776_v27, %v4016_v22  ;;  %v2791_v49 = vcombine.low %v2759_v48, %v2774_v4  ;;  %v2792_v19 = vcombine.high %v2759_v48, %v2774_v4  ;;  %v2573_v40 = vpop.f32.mrb[36].mxu0  ;;  %v3671_v4 = vld [vmem:[#allocation8 + $0x10] sm:$0xff]  }
 0x44b   :  { %v2676_v63 = vmul.f32 %v3704_v18, %v2573_v40  ;;  %v3587_v21 = vpop.f32.mrb[37].mxu0  ;;  %v4464_v47 = vrot.slane %v2983_v17, %v4016_v22  ;;  %v2825_v41 = vrot.slane %v2811_v62, %v4007_v11  ;;  %3604 = vmatpush3.bf16.msra.mxu1 %v3670_v51 }
 0x44c   :  { %v2799_v23 = vrot.slane %v2791_v49, %v4016_v22  ;;  %v2806_v25 = vrot.slane %v2792_v19, %v4016_v22  ;;  %v2993_v3 = vcombine.low %v2783_v12, %v2790_v39  ;;  %v3416_v54 = vcombine.high %v2783_v12, %v2790_v39  ;;  %v2576_v31 = vpop.f32.mrb[38].mxu0  ;;  %3605 = vmatprep.subr.bf16.mxu1 %v3671_v4  ;;  %v3706_v12 = vpop.eup %3705  ;;  %v3673_v39 = vld [vmem:[#allocation8 + $0x20] sm:$0xff]  }
 0x44d   :  { %v2826_v56 = vcombine.high %v2676_v63, %v3838_v36  ;;  %v2833_v42 = vrot.slane %v2676_v63, %v4007_v11  ;;  %v3588_v55 = vpop.f32.mrb[39].mxu0  ;;  %v2992_v43 = vcombine.high %v4461_v52, %v4464_v47  ;;  %v2991_v37 = vcombine.low %v4461_v52, %v4464_v47 }
 0x44e   :  { %v3000_v38 = vrot.slane %v2993_v3, %v4007_v11  ;;  %v3008_v5 = vrot.slane %v3416_v54, %v4007_v11  ;;  %v3009_v46 = vcombine.low %v2799_v23, %v2806_v25  ;;  %v3417_v26 = vcombine.high %v2799_v23, %v2806_v25 }
 0x44f   :  { %v2840_v53 = vrot.slane %v2826_v56, %v4007_v11  ;;  %v2841_v44 = vcombine.low %v2818_v20, %v2833_v42  ;;  %v2842_v45 = vcombine.high %v2818_v20, %v2833_v42  ;;  %3147 = vrot.lane.b32.xlu1 %v2992_v43, %s3835_s2  ;;  %3606 = vmatpush3.bf16.msra.mxu1 %v3671_v4  ;;  %v3674_v56 = vld [vmem:[#allocation8 + $0x28] sm:$0xff]  }
 0x450   :  { %v3016_v50 = vrot.slane %v3009_v46, %v4007_v11  ;;  %v3024_v6 = vrot.slane %v3417_v26, %v4007_v11  ;;  %v3025_v34 = vcombine.low %v3000_v38, %v3008_v5  ;;  %3607 = vmatprep.subr.bf16.mxu1 %v3672_v30  ;;  %v3708_v40 = vpop.eup %3707 }
 0x451   :  { %v2849_v0 = vrot.slane %v2841_v44, %v4016_v22  ;;  %v2856_v2 = vrot.slane %v2842_v45, %v4016_v22  ;;  %v2857_v7 = vcombine.low %v2825_v41, %v2840_v53  ;;  %v2858_v8 = vcombine.high %v2825_v41, %v2840_v53  ;;  %v3675_v44 = vld [vmem:[#allocation8 + $0x30] sm:$0xff]  }
 0x452   :  { %v3033_v9 = vcombine.low %v3016_v50, %v3024_v6  ;;  %v4487_v59 = vrot.slane %v3025_v34, %v4016_v22 }
 0x453   :  { %v2865_v58 = vrot.slane %v2857_v7, %v4016_v22  ;;  %v2872_v15 = vrot.slane %v2858_v8, %v4016_v22  ;;  %v3043_v10 = vcombine.low %v2849_v0, %v2856_v2  ;;  %v3418_v16 = vcombine.high %v2849_v0, %v2856_v2  ;;  %3608 = vmatpush3.bf16.msra.mxu1 %v3672_v30 }
 0x454   :  { %v4490_v1 = vrot.slane %v3033_v9, %v4016_v22  ;;  %3609 = vmatprep.subr.bf16.mxu1 %v3673_v39 }
 0x455   :  { %v3050_v60 = vrot.slane %v3043_v10, %v4007_v11  ;;  %v3058_v24 = vrot.slane %v3418_v16, %v4007_v11  ;;  %v3059_v29 = vcombine.low %v2865_v58, %v2872_v15  ;;  %v3419_v48 = vcombine.high %v2865_v58, %v2872_v15 }
 0x456   :  { %v3042_v28 = vcombine.high %v4487_v59, %v4490_v1  ;;  %v3041_v27 = vcombine.low %v4487_v59, %v4490_v1 }
 0x457   :  { %v3066_v62 = vrot.slane %v3059_v29, %v4007_v11  ;;  %v3074_v61 = vrot.slane %v3419_v48, %v4007_v11  ;;  %v3075_v17 = vcombine.low %v3050_v60, %v3058_v24  ;;  %3610 = vmatpush3.bf16.msra.mxu1 %v3673_v39  ;;  %v3676_v24 = vld [vmem:[#allocation8 + $0x38] sm:$0xff]  }
 0x458   :  { %3149 = vrot.lane.b32.xlu0 %v3042_v28, %s3835_s2  ;;  %3611 = vmatprep.subr.bf16.mxu1 %v3674_v56 }
 0x459   :  { %v3083_v18 = vcombine.low %v3066_v62, %v3074_v61  ;;  %v4502_v49 = vrot.slane %v3075_v17, %v4016_v22  ;;  %v3422_v61 = vld [vmem:[%s4581_s7] ss:$0 sm:$0xff] }
 0x45b   :  { %v4505_v19 = vrot.slane %v3083_v18, %v4016_v22  ;;  %3612 = vmatpush3.bf16.msra.mxu1 %v3674_v56 }
 0x45c   :  { %3613 = vmatprep.subr.bf16.mxu1 %v3675_v44 }
 0x45d   :  { %v2619_v20 = vpop.f32.mrb[28].mxu1  ;;  %v2665_v63 = vpop.f32.mrb[40].mxu0  ;;  %v3092_v21 = vcombine.high %v4502_v49, %v4505_v19  ;;  %v3091_v23 = vcombine.low %v4502_v49, %v4505_v19  ;;  %v3423_v49 = vld [vmem:[%s4579_s5] ss:$0 sm:$0xff]  ;;  %s3842_s5 = smov [#allocation10]  }
 0x45e   :  { %v2677_v25 = vmul.f32 %v3706_v12, %v2619_v20  ;;  %v2678_v3 = vmul.f32 %v3708_v40, %v2665_v63  ;;  %v3593_v54 = vpop.f32.mrb[29].mxu1  ;;  %v3599_v31 = vpop.f32.mrb[41].mxu0 }
 0x45f   :  { %v2622_v42 = vpop.f32.mrb[30].mxu1  ;;  %3151 = vrot.lane.b32.xlu1 %v3092_v21, %s3835_s2  ;;  %v2668_v55 = vpop.f32.mrb[42].mxu0  ;;  %3614 = vmatpush3.bf16.msra.mxu1 %v3675_v44 }
 0x460   :  { %v2877_v43 = vcombine.high %v2677_v25, %v3838_v36  ;;  %v2884_v38 = vrot.slane %v2677_v25, %v4007_v11  ;;  %v2892_v5 = vcombine.high %v2678_v3, %v3838_v36  ;;  %v2899_v46 = vrot.slane %v2678_v3, %v4007_v11  ;;  %v3594_v26 = vpop.f32.mrb[31].mxu1  ;;  %v3600_v57 = vpop.f32.mrb[43].mxu0  ;;  %3615 = vmatprep.subr.bf16.mxu1 %v3676_v24  ;;  %v3432_v3 = vld [vmem:[%s4580_s6] ss:$0 sm:$0xff]  ;;  %s3336_s6 = sshll.u32 %s3842_s5, 4  ;;  %s3337_s6 = int_to_ptr.vmem [resolvable:$true] %s3336_s6 }
 0x461   :  { %v3317_v19 = vmul.f32 %v3432_v3, %v3955_v32  ;;  %v3315_v54 = vmul.f32 %v3432_v3, %v3949_v13  ;;  %v3318_v42 = vmul.f32 %v3432_v3, %v3957_v33  ;;  %s3797_s0 = scalar_lea.vmem %s3337_s6, 512  ;;  %p3802_p5 = scmp.lt.s32.totalorder %s3337_s6, %s3337_s6 }
 0x462   :  { %v2891_v51 = vrot.slane %v2877_v43, %v4007_v11  ;;  %v2906_v35 = vrot.slane %v2892_v5, %v4007_v11  ;;  %v2907_v41 = vcombine.low %v2884_v38, %v2899_v46  ;;  %v2908_v53 = vcombine.high %v2884_v38, %v2899_v46  ;;  %p3798_p4 = scmp.ne.s32.totalorder %s3337_s6, %s3797_s0  ;;  %p3803_p6 = scmp.lt.s32.totalorder %s3797_s0, %s3797_s0 }
 0x463   :  { %3616 = vmatpush3.bf16.msra.mxu1 %v3676_v24  ;;  %v3316_v38 = vmul.f32 %v3432_v3, %v3951_v14  ;;  %v3321_v46 = vadd.f32 %v3422_v61, %v3317_v19  ;;  %v3322_v44 = vadd.f32 %v3422_v61, %v3318_v42 }
 0x464   :  { %v2915_v45 = vrot.slane %v2907_v41, %v4016_v22  ;;  %v2922_v50 = vrot.slane %v2908_v53, %v4016_v22  ;;  %v2923_v6 = vcombine.low %v2891_v51, %v2906_v35  ;;  %v2924_v34 = vcombine.high %v2891_v51, %v2906_v35  ;;  %p3804_p7 = por %p3803_p6, %p3802_p5 }
 0x465   :  { %v3319_v35 = vadd.f32 %v3422_v61, %v3315_v54 }
 0x466   :  { %v2931_v36 = vrot.slane %v2923_v6, %v4016_v22  ;;  %v2938_v0 = vrot.slane %v2924_v34, %v4016_v22  ;;  %v3093_v2 = vcombine.low %v2915_v45, %v2922_v50  ;;  %v3420_v7 = vcombine.high %v2915_v45, %v2922_v50  ;;  %p3805_p8 = pnand %p3804_p7, %p3798_p4 }
 0x467   :  { %v3320_v50 = vadd.f32 %v3422_v61, %v3316_v38 }
 0x468   :  { %v3100_v8 = vrot.slane %v3093_v2, %v4007_v11  ;;  %v3108_v9 = vrot.slane %v3420_v7, %v4007_v11  ;;  %v3109_v58 = vcombine.low %v2931_v36, %v2938_v0  ;;  %v3421_v15 = vcombine.high %v2931_v36, %v2938_v0 }
 0x46a   :  { %v3116_v10 = vrot.slane %v3109_v58, %v4007_v11  ;;  %v3124_v16 = vrot.slane %v3421_v15, %v4007_v11  ;;  %v3125_v60 = vcombine.low %v3100_v8, %v3108_v9 }
 0x46c   :  { %v3133_v29 = vcombine.low %v3116_v10, %v3124_v16  ;;  %v3132_v48 = vrot.slane %v3125_v60, %v4016_v22 }
 0x46e   :  { %v3140_v4 = vrot.slane %v3133_v29, %v4016_v22 }
 0x470   :  { %v3142_v28 = vcombine.high %v3132_v48, %v3140_v4  ;;  %v3141_v30 = vcombine.low %v3132_v48, %v3140_v4 }
 0x472   :  { %3153 = vrot.lane.b32.xlu1 %v3142_v28, %s3835_s2 }
 0x4c1   :  { %v3148_v62 = vpop.permute.xlu1 %3147 }
 0x4c2   :  { %v3159_v11 = vsel %vm1844_vm1, %v2991_v37, %v3148_v62 }
 0x4c3   :  { %v3171_v17 = vadd.f32 %v3422_v61, %v3159_v11 }
 0x4c5   :  { %v3175_v39 = vadd.f32 %v3171_v17, %v3949_v13 }
 0x4ca   :  { %v3150_v18 = vpop.permute.xlu0 %3149 }
 0x4cb   :  { %v3160_v22 = vsel %vm1844_vm1, %v3041_v27, %v3150_v18 }
 0x4cc   :  { %v3172_v12 = vadd.f32 %v3422_v61, %v3160_v22 }
 0x4ce   :  { %v3176_v40 = vadd.f32 %v3172_v12, %v3951_v14 }
 0x4d0   :  { %v3179_v20 = vpack.c.bf16 %v3176_v40, %v3175_v39 }
 0x4d1   :  { %v3152_v63 = vpop.permute.xlu1 %3151 }
 0x4d2   :  { %3617 = vmatprep.mubr.bf16.mxu1 %v3179_v20  ;;  %v3161_v52 = vsel %vm1844_vm1, %v3091_v23, %v3152_v63 }
 0x4d3   :  { %v3173_v47 = vadd.f32 %v3422_v61, %v3161_v52 }
 0x4d5   :  { %v3177_v1 = vadd.f32 %v3173_v47, %v3955_v32 }
 0x4e4   :  { %v3154_v37 = vpop.permute.xlu1 %3153 }
 0x4e5   :  { %v3162_v21 = vsel %vm1844_vm1, %v3141_v30, %v3154_v37 }
 0x4e6   :  { %v3174_v59 = vadd.f32 %v3422_v61, %v3162_v21 }
 0x4e8   :  { %v3178_v27 = vadd.f32 %v3174_v59, %v3957_v33 }
 0x4ea   :  { %v3180_v25 = vpack.c.bf16 %v3178_v27, %v3177_v1 }
 0x4ec   :  { %3618 = vmatmul.mubr.bf16.vlgmr.msra.gmra.mrb[32].mxu1 %v3180_v25 }
 0x5bf   :  { %v3619_v23 = vpop.f32.mrb[32].mxu1 }
 0x5c0   :  { %v3295_v31 = vadd.f32 %v3619_v23, %v3423_v49  ;;  %v3286_v56 = vpop.f32.mrb[33].mxu1 }
 0x5c1   :  { %v3287_v55 = vadd.f32 %v3423_v49, %v3286_v56  ;;  %v3620_v43 = vpop.f32.mrb[34].mxu1 }
 0x5c2   :  { %v3303_v5 = vmax.f32 %v3295_v31, 0.0  ;;  %v3298_v26 = vadd.f32 %v3620_v43, %v3423_v49  ;;  %v3289_v57 = vpop.f32.mrb[35].mxu1 }
 0x5c3   :  { %v3301_v51 = vmax.f32 %v3287_v55, 0.0  ;;  %v3290_v41 = vadd.f32 %v3423_v49, %v3289_v57 }
 0x5c4   :  { %v3313_v53 = vmul.f32 %v3432_v3, %v3303_v5  ;;  %v3304_v32 = vmax.f32 %v3298_v26, 0.0 }
 0x5c5   :  { %v3311_v45 = vmul.f32 %v3432_v3, %v3301_v51  ;;  %v3302_v13 = vmax.f32 %v3290_v41, 0.0 }
 0x5c6   :  { %v3325_v6 = vadd.f32 %v3321_v46, %v3313_v53  ;;  %v3314_v34 = vmul.f32 %v3432_v3, %v3304_v32 }
 0x5c7   :  { %v3323_v33 = vadd.f32 %v3319_v35, %v3311_v45  ;;  %v3312_v36 = vmul.f32 %v3432_v3, %v3302_v13 }
 0x5c8   :  { %3329 = vst [vmem:[#allocation10 + $0x10] sm:$0xff] %v3325_v6  ;;  %v3326_v14 = vadd.f32 %v3322_v44, %v3314_v34 }
 0x5c9   :  { %3327 = vst [vmem:[#allocation10] sm:$0xff] %v3323_v33  ;;  %v3324_v0 = vadd.f32 %v3320_v50, %v3312_v36 }
 0x5ca   :  { %3330 = vst [vmem:[#allocation10 + $0x18] sm:$0xff] %v3326_v14 }
 0x5cb   :  { %3328 = vst [vmem:[#allocation10 + $0x8] sm:$0xff] %v3324_v0 }
 0x5cc   :  { %3808 = shalt.err (!%p3805_p8)
}
 0x5cd   :  { %s3809_s20 = scalar_lea.hbm %s4582_s8, 512 }
 0x5ce   :  { %p3810_p9 = scmp.ne.s32.totalorder %s4582_s8, %s3809_s20  ;;  %p3813_p10 = scmp.lt.u32.totalorder %s3809_s20, %s4582_s8 }
 0x5d0   :  { %p3815_p11 = pnand %p3813_p10, %p3810_p9 }
 0x5d2   :  { %3818 = shalt.err (!%p3815_p11)
}
 0x5d3   :  { %3342 = dma.vmem_to_hbm [thread:$0]  %s3337_s6, 512, %s4582_s8, [#allocation4], %s3829_s1, %s3829_s1, %s3830_s27  }
 0x5d4   :  { %3825 = dma.done.wait [#allocation4], 512  }
 0x5d5   :  { %3826 = vsyncadd [#allocation4], 4294966784 }
 0x5d6   :  { %3346 = vsyncpa [#allocation3], 1 }
 0x5d7   :  { %3347 = vsyncpa [#allocation6], 1 }
 0x5d8   :  { %3348 = vsyncpa [#allocation9], 1 }
 0x5d9   :  { %3349 = vsyncpa [#allocation4], 1 }

</bundles_post_ra>
